<compile_context>
chip_gen: v6e
topology: v6e:2x2x1
jax: 0.10.0
libtpu: 0.0.40
codegen_flags: <defaults>
</compile_context>

<pallas_src>
import jax
import jax.numpy as jnp
import numpy as np
from jax.experimental import pallas as pl
from jax.experimental.pallas import tpu as pltpu


def gnn_kernel(h_seq_ref, m_seq_ref, wih_ref, whh_ref, bih_ref, bhh_ref,
               h0_ref, out_ref):
    T, B, H = h_seq_ref.shape

    # ---- hoisted input projection (independent of the recurrence) ----------
    # One (T*B, H) x (H, H) matmul per gate instead of T tiny matmuls on the
    # serial dependency chain.  (T,B,H) -> (T*B,H) is a leading-dim collapse
    # (B == 8 sublanes), so the reshape is layout-free.
    x_all = h_seq_ref[...].reshape(T * B, H)
    gi_r = (jnp.dot(x_all, wih_ref[0], preferred_element_type=jnp.float32)
            + bih_ref[0]).reshape(T, B, H)
    gi_i = (jnp.dot(x_all, wih_ref[1], preferred_element_type=jnp.float32)
            + bih_ref[1]).reshape(T, B, H)
    gi_n = (jnp.dot(x_all, wih_ref[2], preferred_element_type=jnp.float32)
            + bih_ref[2]).reshape(T, B, H)

    whh_r, whh_i, whh_n = whh_ref[0], whh_ref[1], whh_ref[2]
    bhh_r, bhh_i, bhh_n = bhh_ref[0], bhh_ref[1], bhh_ref[2]

    # ---- serial recurrence over time (fully unrolled; T is static) ---------
    h = h0_ref[...]                                   # (B, H)
    for t in range(T):                                # static indices only
        h_r = jnp.dot(h, whh_r, preferred_element_type=jnp.float32) + bhh_r
        h_i = jnp.dot(h, whh_i, preferred_element_type=jnp.float32) + bhh_i
        h_n = jnp.dot(h, whh_n, preferred_element_type=jnp.float32) + bhh_n
        resetgate = jax.nn.sigmoid(gi_r[t] + h_r)
        inputgate = jax.nn.sigmoid(gi_i[t] + h_i)
        newgate = jnp.tanh(gi_n[t] + resetgate * h_n)
        concentr = m_seq_ref[t] * inputgate           # m = (g > 0.01) * g, precomputed
        h = (1.0 - concentr) * h + concentr * newgate

    out_ref[...] = h


def gnn_forward(hidden, g_item_interest, params, h0):
    """hidden: (B,T,H) f32, g_item_interest: (B,T) f32, h0: (B,H) f32 -> (B,H)."""
    B, T, H = hidden.shape

    # Time-major so the per-step access in the kernel is a leading-dim slice.
    h_seq = jnp.transpose(hidden, (1, 0, 2))                        # (T, B, H)

    # Precompute the interest gate scalar (g > 0.01) * g, broadcast over H, so
    # the kernel's serial path does a single multiply per step.
    g_t = jnp.transpose(g_item_interest, (1, 0))                    # (T, B)
    m = jnp.where(g_t > 0.01, g_t, 0.0).astype(jnp.float32)
    m_seq = jnp.broadcast_to(m[:, :, None], (T, B, H))              # (T, B, H)

    # Gate-split, pre-transposed weights: wih3[k] = w_ih[k*H:(k+1)*H].T
    wih3 = jnp.transpose(params["w_ih"].reshape(3, H, H), (0, 2, 1))  # (3, H, H)
    whh3 = jnp.transpose(params["w_hh"].reshape(3, H, H), (0, 2, 1))  # (3, H, H)
    bih3 = params["b_ih"].reshape(3, 1, H)
    bhh3 = params["b_hh"].reshape(3, 1, H)

    vmem = lambda: pl.BlockSpec(memory_space=pltpu.MemorySpace.VMEM)
    return pl.pallas_call(
        gnn_kernel,
        out_shape=jax.ShapeDtypeStruct((B, H), jnp.float32),
        in_specs=[vmem() for _ in range(7)],   # whole arrays resident in VMEM
        out_specs=vmem(),
    )(h_seq, m_seq, wih3, whh3, bih3, bhh3, h0)


def gnn_reference(hidden, g_item_interest, params, h0):
    """Pure-JAX reference matching the PyTorch GNNCell loop."""
    H = hidden.shape[2]
    w_ih, w_hh = params["w_ih"], params["w_hh"]
    b_ih, b_hh = params["b_ih"], params["b_hh"]

    def step(h_prev, inp):
        x_t, g_t = inp
        gi = x_t @ w_ih.T + b_ih
        gh = h_prev @ w_hh.T + b_hh
        i_r, i_i, i_n = gi[:, :H], gi[:, H:2 * H], gi[:, 2 * H:]
        h_r, h_i, h_n = gh[:, :H], gh[:, H:2 * H], gh[:, 2 * H:]
        resetgate = jax.nn.sigmoid(i_r + h_r)
        inputgate = jax.nn.sigmoid(i_i + h_i)
        newgate = jnp.tanh(i_n + resetgate * h_n)
        g = g_t.reshape(-1, 1)
        concentr = (g > 0.01).astype(jnp.float32) * g * inputgate
        hy = (1 - concentr) * h_prev + concentr * newgate
        return hy, None

    xs = (jnp.transpose(hidden, (1, 0, 2)), jnp.transpose(g_item_interest, (1, 0)))
    h_final, _ = jax.lax.scan(step, h0, xs)
    return h_final


if __name__ == "__main__":
    B, T, H = 8, 8, 32        # batch, sequence length, hidden_size
    key = jax.random.PRNGKey(0)
    k_wih, k_whh, k_bih, k_bhh, k_hid, k_g, k_h0 = jax.random.split(key, 7)

    params = {
        "w_ih": jax.random.normal(k_wih, (3 * H, H), jnp.float32),
        "w_hh": jax.random.normal(k_whh, (3 * H, H), jnp.float32),
        "b_ih": jax.random.normal(k_bih, (3 * H,), jnp.float32),
        "b_hh": jax.random.normal(k_bhh, (3 * H,), jnp.float32),
    }

    hidden = jax.random.normal(k_hid, (B, T, H), jnp.float32)
    # interest scores in [0, 1); thresholded at 0.01 inside the cell
    g_item_interest = jax.random.uniform(k_g, (B, T), jnp.float32)
    # deterministic stand-in for the torch.randn(...) initial hidden state
    h0 = jax.random.normal(k_h0, (B, H), jnp.float32)

    out = gnn_forward(hidden, g_item_interest, params, h0)
    out = jax.block_until_ready(out)

    ref = gnn_reference(hidden, g_item_interest, params, h0)
    np.testing.assert_allclose(np.asarray(out), np.asarray(ref),
                               rtol=1e-5, atol=1e-5)
    print("KERNEL_OK")
</pallas_src>

<mosaic_0001>
module attributes {stable_mosaic.version = 11 : i64} {
  func.func @gnn_kernel(%arg0: memref<8x8x32xf32, #tpu.memory_space<vmem>>, %arg1: memref<8x8x32xf32, #tpu.memory_space<vmem>>, %arg2: memref<3x32x32xf32, #tpu.memory_space<vmem>>, %arg3: memref<3x32x32xf32, #tpu.memory_space<vmem>>, %arg4: memref<3x1x32xf32, #tpu.memory_space<vmem>>, %arg5: memref<3x1x32xf32, #tpu.memory_space<vmem>>, %arg6: memref<8x32xf32, #tpu.memory_space<vmem>>, %arg7: memref<8x32xf32, #tpu.memory_space<vmem>>) attributes {dimension_semantics = [], scalar_prefetch = 0 : i64, scratch_operands = 0 : i64, tpu.core_type = #tpu.core_type<tc>} {
    %c0 = arith.constant 0 : index
    %c0_0 = arith.constant 0 : index
    %c0_1 = arith.constant 0 : index
    %0 = vector.load %arg0[%c0, %c0_0, %c0_1] : memref<8x8x32xf32, #tpu.memory_space<vmem>>, vector<8x8x32xf32>
    %1 = vector.shape_cast %0 : vector<8x8x32xf32> to vector<64x32xf32>
    %c0_2 = arith.constant 0 : index
    %c0_3 = arith.constant 0 : index
    %c0_4 = arith.constant 0 : index
    %2 = vector.load %arg2[%c0_2, %c0_3, %c0_4] : memref<3x32x32xf32, #tpu.memory_space<vmem>>, vector<1x32x32xf32>
    %3 = vector.shape_cast %2 : vector<1x32x32xf32> to vector<32x32xf32>
    %cst = arith.constant dense<0.000000e+00> : vector<64x32xf32>
    %4 = tpu.matmul %1, %3, %cst {dimension_numbers = #tpu.dot_dimension_numbers<[1], [0], [0], [1], [0, 0, 1, 1], [], []>} : vector<64x32xf32>, vector<32x32xf32>, vector<64x32xf32> -> vector<64x32xf32>
    %c0_5 = arith.constant 0 : index
    %c0_6 = arith.constant 0 : index
    %c0_7 = arith.constant 0 : index
    %5 = vector.load %arg4[%c0_5, %c0_6, %c0_7] : memref<3x1x32xf32, #tpu.memory_space<vmem>>, vector<1x1x32xf32>
    %6 = vector.shape_cast %5 : vector<1x1x32xf32> to vector<1x32xf32>
    %7 = vector.broadcast %6 : vector<1x32xf32> to vector<64x32xf32>
    %8 = arith.addf %4, %7 : vector<64x32xf32>
    %9 = vector.shape_cast %8 : vector<64x32xf32> to vector<8x8x32xf32>
    %c1 = arith.constant 1 : index
    %c0_8 = arith.constant 0 : index
    %c0_9 = arith.constant 0 : index
    %10 = vector.load %arg2[%c1, %c0_8, %c0_9] : memref<3x32x32xf32, #tpu.memory_space<vmem>>, vector<1x32x32xf32>
    %11 = vector.shape_cast %10 : vector<1x32x32xf32> to vector<32x32xf32>
    %cst_10 = arith.constant dense<0.000000e+00> : vector<64x32xf32>
    %12 = tpu.matmul %1, %11, %cst_10 {dimension_numbers = #tpu.dot_dimension_numbers<[1], [0], [0], [1], [0, 0, 1, 1], [], []>} : vector<64x32xf32>, vector<32x32xf32>, vector<64x32xf32> -> vector<64x32xf32>
    %c1_11 = arith.constant 1 : index
    %c0_12 = arith.constant 0 : index
    %c0_13 = arith.constant 0 : index
    %13 = vector.load %arg4[%c1_11, %c0_12, %c0_13] : memref<3x1x32xf32, #tpu.memory_space<vmem>>, vector<1x1x32xf32>
    %14 = vector.shape_cast %13 : vector<1x1x32xf32> to vector<1x32xf32>
    %15 = vector.broadcast %14 : vector<1x32xf32> to vector<64x32xf32>
    %16 = arith.addf %12, %15 : vector<64x32xf32>
    %17 = vector.shape_cast %16 : vector<64x32xf32> to vector<8x8x32xf32>
    %c2 = arith.constant 2 : index
    %c0_14 = arith.constant 0 : index
    %c0_15 = arith.constant 0 : index
    %18 = vector.load %arg2[%c2, %c0_14, %c0_15] : memref<3x32x32xf32, #tpu.memory_space<vmem>>, vector<1x32x32xf32>
    %19 = vector.shape_cast %18 : vector<1x32x32xf32> to vector<32x32xf32>
    %cst_16 = arith.constant dense<0.000000e+00> : vector<64x32xf32>
    %20 = tpu.matmul %1, %19, %cst_16 {dimension_numbers = #tpu.dot_dimension_numbers<[1], [0], [0], [1], [0, 0, 1, 1], [], []>} : vector<64x32xf32>, vector<32x32xf32>, vector<64x32xf32> -> vector<64x32xf32>
    %c2_17 = arith.constant 2 : index
    %c0_18 = arith.constant 0 : index
    %c0_19 = arith.constant 0 : index
    %21 = vector.load %arg4[%c2_17, %c0_18, %c0_19] : memref<3x1x32xf32, #tpu.memory_space<vmem>>, vector<1x1x32xf32>
    %22 = vector.shape_cast %21 : vector<1x1x32xf32> to vector<1x32xf32>
    %23 = vector.broadcast %22 : vector<1x32xf32> to vector<64x32xf32>
    %24 = arith.addf %20, %23 : vector<64x32xf32>
    %25 = vector.shape_cast %24 : vector<64x32xf32> to vector<8x8x32xf32>
    %c0_20 = arith.constant 0 : index
    %c0_21 = arith.constant 0 : index
    %c0_22 = arith.constant 0 : index
    %26 = vector.load %arg3[%c0_20, %c0_21, %c0_22] : memref<3x32x32xf32, #tpu.memory_space<vmem>>, vector<1x32x32xf32>
    %27 = vector.shape_cast %26 : vector<1x32x32xf32> to vector<32x32xf32>
    %c1_23 = arith.constant 1 : index
    %c0_24 = arith.constant 0 : index
    %c0_25 = arith.constant 0 : index
    %28 = vector.load %arg3[%c1_23, %c0_24, %c0_25] : memref<3x32x32xf32, #tpu.memory_space<vmem>>, vector<1x32x32xf32>
    %29 = vector.shape_cast %28 : vector<1x32x32xf32> to vector<32x32xf32>
    %c2_26 = arith.constant 2 : index
    %c0_27 = arith.constant 0 : index
    %c0_28 = arith.constant 0 : index
    %30 = vector.load %arg3[%c2_26, %c0_27, %c0_28] : memref<3x32x32xf32, #tpu.memory_space<vmem>>, vector<1x32x32xf32>
    %31 = vector.shape_cast %30 : vector<1x32x32xf32> to vector<32x32xf32>
    %c0_29 = arith.constant 0 : index
    %c0_30 = arith.constant 0 : index
    %c0_31 = arith.constant 0 : index
    %32 = vector.load %arg5[%c0_29, %c0_30, %c0_31] : memref<3x1x32xf32, #tpu.memory_space<vmem>>, vector<1x1x32xf32>
    %33 = vector.shape_cast %32 : vector<1x1x32xf32> to vector<1x32xf32>
    %c1_32 = arith.constant 1 : index
    %c0_33 = arith.constant 0 : index
    %c0_34 = arith.constant 0 : index
    %34 = vector.load %arg5[%c1_32, %c0_33, %c0_34] : memref<3x1x32xf32, #tpu.memory_space<vmem>>, vector<1x1x32xf32>
    %35 = vector.shape_cast %34 : vector<1x1x32xf32> to vector<1x32xf32>
    %c2_35 = arith.constant 2 : index
    %c0_36 = arith.constant 0 : index
    %c0_37 = arith.constant 0 : index
    %36 = vector.load %arg5[%c2_35, %c0_36, %c0_37] : memref<3x1x32xf32, #tpu.memory_space<vmem>>, vector<1x1x32xf32>
    %37 = vector.shape_cast %36 : vector<1x1x32xf32> to vector<1x32xf32>
    %c0_38 = arith.constant 0 : index
    %c0_39 = arith.constant 0 : index
    %38 = vector.load %arg6[%c0_38, %c0_39] : memref<8x32xf32, #tpu.memory_space<vmem>>, vector<8x32xf32>
    %cst_40 = arith.constant dense<0.000000e+00> : vector<8x32xf32>
    %39 = tpu.matmul %38, %27, %cst_40 {dimension_numbers = #tpu.dot_dimension_numbers<[1], [0], [0], [1], [0, 0, 1, 1], [], []>} : vector<8x32xf32>, vector<32x32xf32>, vector<8x32xf32> -> vector<8x32xf32>
    %40 = vector.broadcast %33 : vector<1x32xf32> to vector<8x32xf32>
    %41 = arith.addf %39, %40 : vector<8x32xf32>
    %cst_41 = arith.constant dense<0.000000e+00> : vector<8x32xf32>
    %42 = tpu.matmul %38, %29, %cst_41 {dimension_numbers = #tpu.dot_dimension_numbers<[1], [0], [0], [1], [0, 0, 1, 1], [], []>} : vector<8x32xf32>, vector<32x32xf32>, vector<8x32xf32> -> vector<8x32xf32>
    %43 = vector.broadcast %35 : vector<1x32xf32> to vector<8x32xf32>
    %44 = arith.addf %42, %43 : vector<8x32xf32>
    %cst_42 = arith.constant dense<0.000000e+00> : vector<8x32xf32>
    %45 = tpu.matmul %38, %31, %cst_42 {dimension_numbers = #tpu.dot_dimension_numbers<[1], [0], [0], [1], [0, 0, 1, 1], [], []>} : vector<8x32xf32>, vector<32x32xf32>, vector<8x32xf32> -> vector<8x32xf32>
    %46 = vector.broadcast %37 : vector<1x32xf32> to vector<8x32xf32>
    %47 = arith.addf %45, %46 : vector<8x32xf32>
    %48 = vector.extract_strided_slice %9 {offsets = [0, 0, 0], sizes = [1, 8, 32], strides = [1, 1, 1]} : vector<8x8x32xf32> to vector<1x8x32xf32>
    %49 = vector.shape_cast %48 : vector<1x8x32xf32> to vector<8x32xf32>
    %50 = arith.addf %49, %41 : vector<8x32xf32>
    %51 = arith.negf %50 : vector<8x32xf32>
    %52 = math.exp %51 : vector<8x32xf32>
    %cst_43 = arith.constant 1.000000e+00 : f32
    %53 = vector.broadcast %cst_43 : f32 to vector<8x32xf32>
    %54 = arith.addf %53, %52 : vector<8x32xf32>
    %55 = arith.divf %53, %54 : vector<8x32xf32>
    %56 = vector.extract_strided_slice %17 {offsets = [0, 0, 0], sizes = [1, 8, 32], strides = [1, 1, 1]} : vector<8x8x32xf32> to vector<1x8x32xf32>
    %57 = vector.shape_cast %56 : vector<1x8x32xf32> to vector<8x32xf32>
    %58 = arith.addf %57, %44 : vector<8x32xf32>
    %59 = arith.negf %58 : vector<8x32xf32>
    %60 = math.exp %59 : vector<8x32xf32>
    %cst_44 = arith.constant 1.000000e+00 : f32
    %61 = vector.broadcast %cst_44 : f32 to vector<8x32xf32>
    %62 = arith.addf %61, %60 : vector<8x32xf32>
    %63 = arith.divf %61, %62 : vector<8x32xf32>
    %64 = vector.extract_strided_slice %25 {offsets = [0, 0, 0], sizes = [1, 8, 32], strides = [1, 1, 1]} : vector<8x8x32xf32> to vector<1x8x32xf32>
    %65 = vector.shape_cast %64 : vector<1x8x32xf32> to vector<8x32xf32>
    %66 = arith.mulf %55, %47 : vector<8x32xf32>
    %67 = arith.addf %65, %66 : vector<8x32xf32>
    %68 = math.tanh %67 : vector<8x32xf32>
    %c0_45 = arith.constant 0 : index
    %c0_46 = arith.constant 0 : index
    %c0_47 = arith.constant 0 : index
    %69 = vector.load %arg1[%c0_45, %c0_46, %c0_47] : memref<8x8x32xf32, #tpu.memory_space<vmem>>, vector<1x8x32xf32>
    %70 = vector.shape_cast %69 : vector<1x8x32xf32> to vector<8x32xf32>
    %71 = arith.mulf %70, %63 : vector<8x32xf32>
    %cst_48 = arith.constant 1.000000e+00 : f32
    %72 = vector.broadcast %cst_48 : f32 to vector<8x32xf32>
    %73 = arith.subf %72, %71 : vector<8x32xf32>
    %74 = arith.mulf %73, %38 : vector<8x32xf32>
    %75 = arith.mulf %71, %68 : vector<8x32xf32>
    %76 = arith.addf %74, %75 : vector<8x32xf32>
    %cst_49 = arith.constant dense<0.000000e+00> : vector<8x32xf32>
    %77 = tpu.matmul %76, %27, %cst_49 {dimension_numbers = #tpu.dot_dimension_numbers<[1], [0], [0], [1], [0, 0, 1, 1], [], []>} : vector<8x32xf32>, vector<32x32xf32>, vector<8x32xf32> -> vector<8x32xf32>
    %78 = vector.broadcast %33 : vector<1x32xf32> to vector<8x32xf32>
    %79 = arith.addf %77, %78 : vector<8x32xf32>
    %cst_50 = arith.constant dense<0.000000e+00> : vector<8x32xf32>
    %80 = tpu.matmul %76, %29, %cst_50 {dimension_numbers = #tpu.dot_dimension_numbers<[1], [0], [0], [1], [0, 0, 1, 1], [], []>} : vector<8x32xf32>, vector<32x32xf32>, vector<8x32xf32> -> vector<8x32xf32>
    %81 = vector.broadcast %35 : vector<1x32xf32> to vector<8x32xf32>
    %82 = arith.addf %80, %81 : vector<8x32xf32>
    %cst_51 = arith.constant dense<0.000000e+00> : vector<8x32xf32>
    %83 = tpu.matmul %76, %31, %cst_51 {dimension_numbers = #tpu.dot_dimension_numbers<[1], [0], [0], [1], [0, 0, 1, 1], [], []>} : vector<8x32xf32>, vector<32x32xf32>, vector<8x32xf32> -> vector<8x32xf32>
    %84 = vector.broadcast %37 : vector<1x32xf32> to vector<8x32xf32>
    %85 = arith.addf %83, %84 : vector<8x32xf32>
    %86 = vector.extract_strided_slice %9 {offsets = [1, 0, 0], sizes = [1, 8, 32], strides = [1, 1, 1]} : vector<8x8x32xf32> to vector<1x8x32xf32>
    %87 = vector.shape_cast %86 : vector<1x8x32xf32> to vector<8x32xf32>
    %88 = arith.addf %87, %79 : vector<8x32xf32>
    %89 = arith.negf %88 : vector<8x32xf32>
    %90 = math.exp %89 : vector<8x32xf32>
    %cst_52 = arith.constant 1.000000e+00 : f32
    %91 = vector.broadcast %cst_52 : f32 to vector<8x32xf32>
    %92 = arith.addf %91, %90 : vector<8x32xf32>
    %93 = arith.divf %91, %92 : vector<8x32xf32>
    %94 = vector.extract_strided_slice %17 {offsets = [1, 0, 0], sizes = [1, 8, 32], strides = [1, 1, 1]} : vector<8x8x32xf32> to vector<1x8x32xf32>
    %95 = vector.shape_cast %94 : vector<1x8x32xf32> to vector<8x32xf32>
    %96 = arith.addf %95, %82 : vector<8x32xf32>
    %97 = arith.negf %96 : vector<8x32xf32>
    %98 = math.exp %97 : vector<8x32xf32>
    %cst_53 = arith.constant 1.000000e+00 : f32
    %99 = vector.broadcast %cst_53 : f32 to vector<8x32xf32>
    %100 = arith.addf %99, %98 : vector<8x32xf32>
    %101 = arith.divf %99, %100 : vector<8x32xf32>
    %102 = vector.extract_strided_slice %25 {offsets = [1, 0, 0], sizes = [1, 8, 32], strides = [1, 1, 1]} : vector<8x8x32xf32> to vector<1x8x32xf32>
    %103 = vector.shape_cast %102 : vector<1x8x32xf32> to vector<8x32xf32>
    %104 = arith.mulf %93, %85 : vector<8x32xf32>
    %105 = arith.addf %103, %104 : vector<8x32xf32>
    %106 = math.tanh %105 : vector<8x32xf32>
    %c1_54 = arith.constant 1 : index
    %c0_55 = arith.constant 0 : index
    %c0_56 = arith.constant 0 : index
    %107 = vector.load %arg1[%c1_54, %c0_55, %c0_56] : memref<8x8x32xf32, #tpu.memory_space<vmem>>, vector<1x8x32xf32>
    %108 = vector.shape_cast %107 : vector<1x8x32xf32> to vector<8x32xf32>
    %109 = arith.mulf %108, %101 : vector<8x32xf32>
    %cst_57 = arith.constant 1.000000e+00 : f32
    %110 = vector.broadcast %cst_57 : f32 to vector<8x32xf32>
    %111 = arith.subf %110, %109 : vector<8x32xf32>
    %112 = arith.mulf %111, %76 : vector<8x32xf32>
    %113 = arith.mulf %109, %106 : vector<8x32xf32>
    %114 = arith.addf %112, %113 : vector<8x32xf32>
    %cst_58 = arith.constant dense<0.000000e+00> : vector<8x32xf32>
    %115 = tpu.matmul %114, %27, %cst_58 {dimension_numbers = #tpu.dot_dimension_numbers<[1], [0], [0], [1], [0, 0, 1, 1], [], []>} : vector<8x32xf32>, vector<32x32xf32>, vector<8x32xf32> -> vector<8x32xf32>
    %116 = vector.broadcast %33 : vector<1x32xf32> to vector<8x32xf32>
    %117 = arith.addf %115, %116 : vector<8x32xf32>
    %cst_59 = arith.constant dense<0.000000e+00> : vector<8x32xf32>
    %118 = tpu.matmul %114, %29, %cst_59 {dimension_numbers = #tpu.dot_dimension_numbers<[1], [0], [0], [1], [0, 0, 1, 1], [], []>} : vector<8x32xf32>, vector<32x32xf32>, vector<8x32xf32> -> vector<8x32xf32>
    %119 = vector.broadcast %35 : vector<1x32xf32> to vector<8x32xf32>
    %120 = arith.addf %118, %119 : vector<8x32xf32>
    %cst_60 = arith.constant dense<0.000000e+00> : vector<8x32xf32>
    %121 = tpu.matmul %114, %31, %cst_60 {dimension_numbers = #tpu.dot_dimension_numbers<[1], [0], [0], [1], [0, 0, 1, 1], [], []>} : vector<8x32xf32>, vector<32x32xf32>, vector<8x32xf32> -> vector<8x32xf32>
    %122 = vector.broadcast %37 : vector<1x32xf32> to vector<8x32xf32>
    %123 = arith.addf %121, %122 : vector<8x32xf32>
    %124 = vector.extract_strided_slice %9 {offsets = [2, 0, 0], sizes = [1, 8, 32], strides = [1, 1, 1]} : vector<8x8x32xf32> to vector<1x8x32xf32>
    %125 = vector.shape_cast %124 : vector<1x8x32xf32> to vector<8x32xf32>
    %126 = arith.addf %125, %117 : vector<8x32xf32>
    %127 = arith.negf %126 : vector<8x32xf32>
    %128 = math.exp %127 : vector<8x32xf32>
    %cst_61 = arith.constant 1.000000e+00 : f32
    %129 = vector.broadcast %cst_61 : f32 to vector<8x32xf32>
    %130 = arith.addf %129, %128 : vector<8x32xf32>
    %131 = arith.divf %129, %130 : vector<8x32xf32>
    %132 = vector.extract_strided_slice %17 {offsets = [2, 0, 0], sizes = [1, 8, 32], strides = [1, 1, 1]} : vector<8x8x32xf32> to vector<1x8x32xf32>
    %133 = vector.shape_cast %132 : vector<1x8x32xf32> to vector<8x32xf32>
    %134 = arith.addf %133, %120 : vector<8x32xf32>
    %135 = arith.negf %134 : vector<8x32xf32>
    %136 = math.exp %135 : vector<8x32xf32>
    %cst_62 = arith.constant 1.000000e+00 : f32
    %137 = vector.broadcast %cst_62 : f32 to vector<8x32xf32>
    %138 = arith.addf %137, %136 : vector<8x32xf32>
    %139 = arith.divf %137, %138 : vector<8x32xf32>
    %140 = vector.extract_strided_slice %25 {offsets = [2, 0, 0], sizes = [1, 8, 32], strides = [1, 1, 1]} : vector<8x8x32xf32> to vector<1x8x32xf32>
    %141 = vector.shape_cast %140 : vector<1x8x32xf32> to vector<8x32xf32>
    %142 = arith.mulf %131, %123 : vector<8x32xf32>
    %143 = arith.addf %141, %142 : vector<8x32xf32>
    %144 = math.tanh %143 : vector<8x32xf32>
    %c2_63 = arith.constant 2 : index
    %c0_64 = arith.constant 0 : index
    %c0_65 = arith.constant 0 : index
    %145 = vector.load %arg1[%c2_63, %c0_64, %c0_65] : memref<8x8x32xf32, #tpu.memory_space<vmem>>, vector<1x8x32xf32>
    %146 = vector.shape_cast %145 : vector<1x8x32xf32> to vector<8x32xf32>
    %147 = arith.mulf %146, %139 : vector<8x32xf32>
    %cst_66 = arith.constant 1.000000e+00 : f32
    %148 = vector.broadcast %cst_66 : f32 to vector<8x32xf32>
    %149 = arith.subf %148, %147 : vector<8x32xf32>
    %150 = arith.mulf %149, %114 : vector<8x32xf32>
    %151 = arith.mulf %147, %144 : vector<8x32xf32>
    %152 = arith.addf %150, %151 : vector<8x32xf32>
    %cst_67 = arith.constant dense<0.000000e+00> : vector<8x32xf32>
    %153 = tpu.matmul %152, %27, %cst_67 {dimension_numbers = #tpu.dot_dimension_numbers<[1], [0], [0], [1], [0, 0, 1, 1], [], []>} : vector<8x32xf32>, vector<32x32xf32>, vector<8x32xf32> -> vector<8x32xf32>
    %154 = vector.broadcast %33 : vector<1x32xf32> to vector<8x32xf32>
    %155 = arith.addf %153, %154 : vector<8x32xf32>
    %cst_68 = arith.constant dense<0.000000e+00> : vector<8x32xf32>
    %156 = tpu.matmul %152, %29, %cst_68 {dimension_numbers = #tpu.dot_dimension_numbers<[1], [0], [0], [1], [0, 0, 1, 1], [], []>} : vector<8x32xf32>, vector<32x32xf32>, vector<8x32xf32> -> vector<8x32xf32>
    %157 = vector.broadcast %35 : vector<1x32xf32> to vector<8x32xf32>
    %158 = arith.addf %156, %157 : vector<8x32xf32>
    %cst_69 = arith.constant dense<0.000000e+00> : vector<8x32xf32>
    %159 = tpu.matmul %152, %31, %cst_69 {dimension_numbers = #tpu.dot_dimension_numbers<[1], [0], [0], [1], [0, 0, 1, 1], [], []>} : vector<8x32xf32>, vector<32x32xf32>, vector<8x32xf32> -> vector<8x32xf32>
    %160 = vector.broadcast %37 : vector<1x32xf32> to vector<8x32xf32>
    %161 = arith.addf %159, %160 : vector<8x32xf32>
    %162 = vector.extract_strided_slice %9 {offsets = [3, 0, 0], sizes = [1, 8, 32], strides = [1, 1, 1]} : vector<8x8x32xf32> to vector<1x8x32xf32>
    %163 = vector.shape_cast %162 : vector<1x8x32xf32> to vector<8x32xf32>
    %164 = arith.addf %163, %155 : vector<8x32xf32>
    %165 = arith.negf %164 : vector<8x32xf32>
    %166 = math.exp %165 : vector<8x32xf32>
    %cst_70 = arith.constant 1.000000e+00 : f32
    %167 = vector.broadcast %cst_70 : f32 to vector<8x32xf32>
    %168 = arith.addf %167, %166 : vector<8x32xf32>
    %169 = arith.divf %167, %168 : vector<8x32xf32>
    %170 = vector.extract_strided_slice %17 {offsets = [3, 0, 0], sizes = [1, 8, 32], strides = [1, 1, 1]} : vector<8x8x32xf32> to vector<1x8x32xf32>
    %171 = vector.shape_cast %170 : vector<1x8x32xf32> to vector<8x32xf32>
    %172 = arith.addf %171, %158 : vector<8x32xf32>
    %173 = arith.negf %172 : vector<8x32xf32>
    %174 = math.exp %173 : vector<8x32xf32>
    %cst_71 = arith.constant 1.000000e+00 : f32
    %175 = vector.broadcast %cst_71 : f32 to vector<8x32xf32>
    %176 = arith.addf %175, %174 : vector<8x32xf32>
    %177 = arith.divf %175, %176 : vector<8x32xf32>
    %178 = vector.extract_strided_slice %25 {offsets = [3, 0, 0], sizes = [1, 8, 32], strides = [1, 1, 1]} : vector<8x8x32xf32> to vector<1x8x32xf32>
    %179 = vector.shape_cast %178 : vector<1x8x32xf32> to vector<8x32xf32>
    %180 = arith.mulf %169, %161 : vector<8x32xf32>
    %181 = arith.addf %179, %180 : vector<8x32xf32>
    %182 = math.tanh %181 : vector<8x32xf32>
    %c3 = arith.constant 3 : index
    %c0_72 = arith.constant 0 : index
    %c0_73 = arith.constant 0 : index
    %183 = vector.load %arg1[%c3, %c0_72, %c0_73] : memref<8x8x32xf32, #tpu.memory_space<vmem>>, vector<1x8x32xf32>
    %184 = vector.shape_cast %183 : vector<1x8x32xf32> to vector<8x32xf32>
    %185 = arith.mulf %184, %177 : vector<8x32xf32>
    %cst_74 = arith.constant 1.000000e+00 : f32
    %186 = vector.broadcast %cst_74 : f32 to vector<8x32xf32>
    %187 = arith.subf %186, %185 : vector<8x32xf32>
    %188 = arith.mulf %187, %152 : vector<8x32xf32>
    %189 = arith.mulf %185, %182 : vector<8x32xf32>
    %190 = arith.addf %188, %189 : vector<8x32xf32>
    %cst_75 = arith.constant dense<0.000000e+00> : vector<8x32xf32>
    %191 = tpu.matmul %190, %27, %cst_75 {dimension_numbers = #tpu.dot_dimension_numbers<[1], [0], [0], [1], [0, 0, 1, 1], [], []>} : vector<8x32xf32>, vector<32x32xf32>, vector<8x32xf32> -> vector<8x32xf32>
    %192 = vector.broadcast %33 : vector<1x32xf32> to vector<8x32xf32>
    %193 = arith.addf %191, %192 : vector<8x32xf32>
    %cst_76 = arith.constant dense<0.000000e+00> : vector<8x32xf32>
    %194 = tpu.matmul %190, %29, %cst_76 {dimension_numbers = #tpu.dot_dimension_numbers<[1], [0], [0], [1], [0, 0, 1, 1], [], []>} : vector<8x32xf32>, vector<32x32xf32>, vector<8x32xf32> -> vector<8x32xf32>
    %195 = vector.broadcast %35 : vector<1x32xf32> to vector<8x32xf32>
    %196 = arith.addf %194, %195 : vector<8x32xf32>
    %cst_77 = arith.constant dense<0.000000e+00> : vector<8x32xf32>
    %197 = tpu.matmul %190, %31, %cst_77 {dimension_numbers = #tpu.dot_dimension_numbers<[1], [0], [0], [1], [0, 0, 1, 1], [], []>} : vector<8x32xf32>, vector<32x32xf32>, vector<8x32xf32> -> vector<8x32xf32>
    %198 = vector.broadcast %37 : vector<1x32xf32> to vector<8x32xf32>
    %199 = arith.addf %197, %198 : vector<8x32xf32>
    %200 = vector.extract_strided_slice %9 {offsets = [4, 0, 0], sizes = [1, 8, 32], strides = [1, 1, 1]} : vector<8x8x32xf32> to vector<1x8x32xf32>
    %201 = vector.shape_cast %200 : vector<1x8x32xf32> to vector<8x32xf32>
    %202 = arith.addf %201, %193 : vector<8x32xf32>
    %203 = arith.negf %202 : vector<8x32xf32>
    %204 = math.exp %203 : vector<8x32xf32>
    %cst_78 = arith.constant 1.000000e+00 : f32
    %205 = vector.broadcast %cst_78 : f32 to vector<8x32xf32>
    %206 = arith.addf %205, %204 : vector<8x32xf32>
    %207 = arith.divf %205, %206 : vector<8x32xf32>
    %208 = vector.extract_strided_slice %17 {offsets = [4, 0, 0], sizes = [1, 8, 32], strides = [1, 1, 1]} : vector<8x8x32xf32> to vector<1x8x32xf32>
    %209 = vector.shape_cast %208 : vector<1x8x32xf32> to vector<8x32xf32>
    %210 = arith.addf %209, %196 : vector<8x32xf32>
    %211 = arith.negf %210 : vector<8x32xf32>
    %212 = math.exp %211 : vector<8x32xf32>
    %cst_79 = arith.constant 1.000000e+00 : f32
    %213 = vector.broadcast %cst_79 : f32 to vector<8x32xf32>
    %214 = arith.addf %213, %212 : vector<8x32xf32>
    %215 = arith.divf %213, %214 : vector<8x32xf32>
    %216 = vector.extract_strided_slice %25 {offsets = [4, 0, 0], sizes = [1, 8, 32], strides = [1, 1, 1]} : vector<8x8x32xf32> to vector<1x8x32xf32>
    %217 = vector.shape_cast %216 : vector<1x8x32xf32> to vector<8x32xf32>
    %218 = arith.mulf %207, %199 : vector<8x32xf32>
    %219 = arith.addf %217, %218 : vector<8x32xf32>
    %220 = math.tanh %219 : vector<8x32xf32>
    %c4 = arith.constant 4 : index
    %c0_80 = arith.constant 0 : index
    %c0_81 = arith.constant 0 : index
    %221 = vector.load %arg1[%c4, %c0_80, %c0_81] : memref<8x8x32xf32, #tpu.memory_space<vmem>>, vector<1x8x32xf32>
    %222 = vector.shape_cast %221 : vector<1x8x32xf32> to vector<8x32xf32>
    %223 = arith.mulf %222, %215 : vector<8x32xf32>
    %cst_82 = arith.constant 1.000000e+00 : f32
    %224 = vector.broadcast %cst_82 : f32 to vector<8x32xf32>
    %225 = arith.subf %224, %223 : vector<8x32xf32>
    %226 = arith.mulf %225, %190 : vector<8x32xf32>
    %227 = arith.mulf %223, %220 : vector<8x32xf32>
    %228 = arith.addf %226, %227 : vector<8x32xf32>
    %cst_83 = arith.constant dense<0.000000e+00> : vector<8x32xf32>
    %229 = tpu.matmul %228, %27, %cst_83 {dimension_numbers = #tpu.dot_dimension_numbers<[1], [0], [0], [1], [0, 0, 1, 1], [], []>} : vector<8x32xf32>, vector<32x32xf32>, vector<8x32xf32> -> vector<8x32xf32>
    %230 = vector.broadcast %33 : vector<1x32xf32> to vector<8x32xf32>
    %231 = arith.addf %229, %230 : vector<8x32xf32>
    %cst_84 = arith.constant dense<0.000000e+00> : vector<8x32xf32>
    %232 = tpu.matmul %228, %29, %cst_84 {dimension_numbers = #tpu.dot_dimension_numbers<[1], [0], [0], [1], [0, 0, 1, 1], [], []>} : vector<8x32xf32>, vector<32x32xf32>, vector<8x32xf32> -> vector<8x32xf32>
    %233 = vector.broadcast %35 : vector<1x32xf32> to vector<8x32xf32>
    %234 = arith.addf %232, %233 : vector<8x32xf32>
    %cst_85 = arith.constant dense<0.000000e+00> : vector<8x32xf32>
    %235 = tpu.matmul %228, %31, %cst_85 {dimension_numbers = #tpu.dot_dimension_numbers<[1], [0], [0], [1], [0, 0, 1, 1], [], []>} : vector<8x32xf32>, vector<32x32xf32>, vector<8x32xf32> -> vector<8x32xf32>
    %236 = vector.broadcast %37 : vector<1x32xf32> to vector<8x32xf32>
    %237 = arith.addf %235, %236 : vector<8x32xf32>
    %238 = vector.extract_strided_slice %9 {offsets = [5, 0, 0], sizes = [1, 8, 32], strides = [1, 1, 1]} : vector<8x8x32xf32> to vector<1x8x32xf32>
    %239 = vector.shape_cast %238 : vector<1x8x32xf32> to vector<8x32xf32>
    %240 = arith.addf %239, %231 : vector<8x32xf32>
    %241 = arith.negf %240 : vector<8x32xf32>
    %242 = math.exp %241 : vector<8x32xf32>
    %cst_86 = arith.constant 1.000000e+00 : f32
    %243 = vector.broadcast %cst_86 : f32 to vector<8x32xf32>
    %244 = arith.addf %243, %242 : vector<8x32xf32>
    %245 = arith.divf %243, %244 : vector<8x32xf32>
    %246 = vector.extract_strided_slice %17 {offsets = [5, 0, 0], sizes = [1, 8, 32], strides = [1, 1, 1]} : vector<8x8x32xf32> to vector<1x8x32xf32>
    %247 = vector.shape_cast %246 : vector<1x8x32xf32> to vector<8x32xf32>
    %248 = arith.addf %247, %234 : vector<8x32xf32>
    %249 = arith.negf %248 : vector<8x32xf32>
    %250 = math.exp %249 : vector<8x32xf32>
    %cst_87 = arith.constant 1.000000e+00 : f32
    %251 = vector.broadcast %cst_87 : f32 to vector<8x32xf32>
    %252 = arith.addf %251, %250 : vector<8x32xf32>
    %253 = arith.divf %251, %252 : vector<8x32xf32>
    %254 = vector.extract_strided_slice %25 {offsets = [5, 0, 0], sizes = [1, 8, 32], strides = [1, 1, 1]} : vector<8x8x32xf32> to vector<1x8x32xf32>
    %255 = vector.shape_cast %254 : vector<1x8x32xf32> to vector<8x32xf32>
    %256 = arith.mulf %245, %237 : vector<8x32xf32>
    %257 = arith.addf %255, %256 : vector<8x32xf32>
    %258 = math.tanh %257 : vector<8x32xf32>
    %c5 = arith.constant 5 : index
    %c0_88 = arith.constant 0 : index
    %c0_89 = arith.constant 0 : index
    %259 = vector.load %arg1[%c5, %c0_88, %c0_89] : memref<8x8x32xf32, #tpu.memory_space<vmem>>, vector<1x8x32xf32>
    %260 = vector.shape_cast %259 : vector<1x8x32xf32> to vector<8x32xf32>
    %261 = arith.mulf %260, %253 : vector<8x32xf32>
    %cst_90 = arith.constant 1.000000e+00 : f32
    %262 = vector.broadcast %cst_90 : f32 to vector<8x32xf32>
    %263 = arith.subf %262, %261 : vector<8x32xf32>
    %264 = arith.mulf %263, %228 : vector<8x32xf32>
    %265 = arith.mulf %261, %258 : vector<8x32xf32>
    %266 = arith.addf %264, %265 : vector<8x32xf32>
    %cst_91 = arith.constant dense<0.000000e+00> : vector<8x32xf32>
    %267 = tpu.matmul %266, %27, %cst_91 {dimension_numbers = #tpu.dot_dimension_numbers<[1], [0], [0], [1], [0, 0, 1, 1], [], []>} : vector<8x32xf32>, vector<32x32xf32>, vector<8x32xf32> -> vector<8x32xf32>
    %268 = vector.broadcast %33 : vector<1x32xf32> to vector<8x32xf32>
    %269 = arith.addf %267, %268 : vector<8x32xf32>
    %cst_92 = arith.constant dense<0.000000e+00> : vector<8x32xf32>
    %270 = tpu.matmul %266, %29, %cst_92 {dimension_numbers = #tpu.dot_dimension_numbers<[1], [0], [0], [1], [0, 0, 1, 1], [], []>} : vector<8x32xf32>, vector<32x32xf32>, vector<8x32xf32> -> vector<8x32xf32>
    %271 = vector.broadcast %35 : vector<1x32xf32> to vector<8x32xf32>
    %272 = arith.addf %270, %271 : vector<8x32xf32>
    %cst_93 = arith.constant dense<0.000000e+00> : vector<8x32xf32>
    %273 = tpu.matmul %266, %31, %cst_93 {dimension_numbers = #tpu.dot_dimension_numbers<[1], [0], [0], [1], [0, 0, 1, 1], [], []>} : vector<8x32xf32>, vector<32x32xf32>, vector<8x32xf32> -> vector<8x32xf32>
    %274 = vector.broadcast %37 : vector<1x32xf32> to vector<8x32xf32>
    %275 = arith.addf %273, %274 : vector<8x32xf32>
    %276 = vector.extract_strided_slice %9 {offsets = [6, 0, 0], sizes = [1, 8, 32], strides = [1, 1, 1]} : vector<8x8x32xf32> to vector<1x8x32xf32>
    %277 = vector.shape_cast %276 : vector<1x8x32xf32> to vector<8x32xf32>
    %278 = arith.addf %277, %269 : vector<8x32xf32>
    %279 = arith.negf %278 : vector<8x32xf32>
    %280 = math.exp %279 : vector<8x32xf32>
    %cst_94 = arith.constant 1.000000e+00 : f32
    %281 = vector.broadcast %cst_94 : f32 to vector<8x32xf32>
    %282 = arith.addf %281, %280 : vector<8x32xf32>
    %283 = arith.divf %281, %282 : vector<8x32xf32>
    %284 = vector.extract_strided_slice %17 {offsets = [6, 0, 0], sizes = [1, 8, 32], strides = [1, 1, 1]} : vector<8x8x32xf32> to vector<1x8x32xf32>
    %285 = vector.shape_cast %284 : vector<1x8x32xf32> to vector<8x32xf32>
    %286 = arith.addf %285, %272 : vector<8x32xf32>
    %287 = arith.negf %286 : vector<8x32xf32>
    %288 = math.exp %287 : vector<8x32xf32>
    %cst_95 = arith.constant 1.000000e+00 : f32
    %289 = vector.broadcast %cst_95 : f32 to vector<8x32xf32>
    %290 = arith.addf %289, %288 : vector<8x32xf32>
    %291 = arith.divf %289, %290 : vector<8x32xf32>
    %292 = vector.extract_strided_slice %25 {offsets = [6, 0, 0], sizes = [1, 8, 32], strides = [1, 1, 1]} : vector<8x8x32xf32> to vector<1x8x32xf32>
    %293 = vector.shape_cast %292 : vector<1x8x32xf32> to vector<8x32xf32>
    %294 = arith.mulf %283, %275 : vector<8x32xf32>
    %295 = arith.addf %293, %294 : vector<8x32xf32>
    %296 = math.tanh %295 : vector<8x32xf32>
    %c6 = arith.constant 6 : index
    %c0_96 = arith.constant 0 : index
    %c0_97 = arith.constant 0 : index
    %297 = vector.load %arg1[%c6, %c0_96, %c0_97] : memref<8x8x32xf32, #tpu.memory_space<vmem>>, vector<1x8x32xf32>
    %298 = vector.shape_cast %297 : vector<1x8x32xf32> to vector<8x32xf32>
    %299 = arith.mulf %298, %291 : vector<8x32xf32>
    %cst_98 = arith.constant 1.000000e+00 : f32
    %300 = vector.broadcast %cst_98 : f32 to vector<8x32xf32>
    %301 = arith.subf %300, %299 : vector<8x32xf32>
    %302 = arith.mulf %301, %266 : vector<8x32xf32>
    %303 = arith.mulf %299, %296 : vector<8x32xf32>
    %304 = arith.addf %302, %303 : vector<8x32xf32>
    %cst_99 = arith.constant dense<0.000000e+00> : vector<8x32xf32>
    %305 = tpu.matmul %304, %27, %cst_99 {dimension_numbers = #tpu.dot_dimension_numbers<[1], [0], [0], [1], [0, 0, 1, 1], [], []>} : vector<8x32xf32>, vector<32x32xf32>, vector<8x32xf32> -> vector<8x32xf32>
    %306 = vector.broadcast %33 : vector<1x32xf32> to vector<8x32xf32>
    %307 = arith.addf %305, %306 : vector<8x32xf32>
    %cst_100 = arith.constant dense<0.000000e+00> : vector<8x32xf32>
    %308 = tpu.matmul %304, %29, %cst_100 {dimension_numbers = #tpu.dot_dimension_numbers<[1], [0], [0], [1], [0, 0, 1, 1], [], []>} : vector<8x32xf32>, vector<32x32xf32>, vector<8x32xf32> -> vector<8x32xf32>
    %309 = vector.broadcast %35 : vector<1x32xf32> to vector<8x32xf32>
    %310 = arith.addf %308, %309 : vector<8x32xf32>
    %cst_101 = arith.constant dense<0.000000e+00> : vector<8x32xf32>
    %311 = tpu.matmul %304, %31, %cst_101 {dimension_numbers = #tpu.dot_dimension_numbers<[1], [0], [0], [1], [0, 0, 1, 1], [], []>} : vector<8x32xf32>, vector<32x32xf32>, vector<8x32xf32> -> vector<8x32xf32>
    %312 = vector.broadcast %37 : vector<1x32xf32> to vector<8x32xf32>
    %313 = arith.addf %311, %312 : vector<8x32xf32>
    %314 = vector.extract_strided_slice %9 {offsets = [7, 0, 0], sizes = [1, 8, 32], strides = [1, 1, 1]} : vector<8x8x32xf32> to vector<1x8x32xf32>
    %315 = vector.shape_cast %314 : vector<1x8x32xf32> to vector<8x32xf32>
    %316 = arith.addf %315, %307 : vector<8x32xf32>
    %317 = arith.negf %316 : vector<8x32xf32>
    %318 = math.exp %317 : vector<8x32xf32>
    %cst_102 = arith.constant 1.000000e+00 : f32
    %319 = vector.broadcast %cst_102 : f32 to vector<8x32xf32>
    %320 = arith.addf %319, %318 : vector<8x32xf32>
    %321 = arith.divf %319, %320 : vector<8x32xf32>
    %322 = vector.extract_strided_slice %17 {offsets = [7, 0, 0], sizes = [1, 8, 32], strides = [1, 1, 1]} : vector<8x8x32xf32> to vector<1x8x32xf32>
    %323 = vector.shape_cast %322 : vector<1x8x32xf32> to vector<8x32xf32>
    %324 = arith.addf %323, %310 : vector<8x32xf32>
    %325 = arith.negf %324 : vector<8x32xf32>
    %326 = math.exp %325 : vector<8x32xf32>
    %cst_103 = arith.constant 1.000000e+00 : f32
    %327 = vector.broadcast %cst_103 : f32 to vector<8x32xf32>
    %328 = arith.addf %327, %326 : vector<8x32xf32>
    %329 = arith.divf %327, %328 : vector<8x32xf32>
    %330 = vector.extract_strided_slice %25 {offsets = [7, 0, 0], sizes = [1, 8, 32], strides = [1, 1, 1]} : vector<8x8x32xf32> to vector<1x8x32xf32>
    %331 = vector.shape_cast %330 : vector<1x8x32xf32> to vector<8x32xf32>
    %332 = arith.mulf %321, %313 : vector<8x32xf32>
    %333 = arith.addf %331, %332 : vector<8x32xf32>
    %334 = math.tanh %333 : vector<8x32xf32>
    %c7 = arith.constant 7 : index
    %c0_104 = arith.constant 0 : index
    %c0_105 = arith.constant 0 : index
    %335 = vector.load %arg1[%c7, %c0_104, %c0_105] : memref<8x8x32xf32, #tpu.memory_space<vmem>>, vector<1x8x32xf32>
    %336 = vector.shape_cast %335 : vector<1x8x32xf32> to vector<8x32xf32>
    %337 = arith.mulf %336, %329 : vector<8x32xf32>
    %cst_106 = arith.constant 1.000000e+00 : f32
    %338 = vector.broadcast %cst_106 : f32 to vector<8x32xf32>
    %339 = arith.subf %338, %337 : vector<8x32xf32>
    %340 = arith.mulf %339, %304 : vector<8x32xf32>
    %341 = arith.mulf %337, %334 : vector<8x32xf32>
    %342 = arith.addf %340, %341 : vector<8x32xf32>
    %c0_107 = arith.constant 0 : index
    %c0_108 = arith.constant 0 : index
    %343 = vector.load %arg7[%c0_107, %c0_108] : memref<8x32xf32, #tpu.memory_space<vmem>>, vector<8x32xf32>
    tpu.vector_store %arg7[%c0_107, %c0_108], %342 {strides = array<i32>} : memref<8x32xf32, #tpu.memory_space<vmem>>, vector<8x32xf32>,
    return
  }
}

</mosaic_0001>

<bundles_post_ra>
// kernel: tpu_custom_call.1
= control target key start
LH: loop header
LB: loop body
LE: loop exit
PB: predicated region body
PF: predicated region fallthrough
CT: control target
= control target key end

     0   :  { %12 = vsyncpa [#allocation3], 0  ;;  %s3781_s0 = inlined_call_operand.hbm [shape: f32[8,8,32], index: 0, kind: input, shape index: {}]   ;;  %s3782_s1 = inlined_call_operand.hbm [shape: f32[8,8,32], index: 1, kind: input, shape index: {}]   ;;  %s3783_s2 = inlined_call_operand.hbm [shape: f32[3,32,32], index: 2, kind: input, shape index: {}]   ;;  %s3784_s3 = inlined_call_operand.hbm [shape: f32[3,32,32], index: 3, kind: input, shape index: {}]   ;;  %s3785_s4 = inlined_call_operand.hbm [shape: f32[3,1,32], index: 4, kind: input, shape index: {}]   ;;  %s3786_s5 = inlined_call_operand.hbm [shape: f32[3,1,32], index: 5, kind: input, shape index: {}]   ;;  %s3787_s6 = inlined_call_operand.vmem [shape: f32[8,32], index: 6, kind: input, shape index: {}]   ;;  %s3788_s7 = inlined_call_operand.hbm [shape: f32[8,32], index: 7, kind: output, shape index: {}]  }
   0x1   :  { %13 = vsyncpa [#allocation6], 0 }
   0x2   :  { %14 = vsyncpa [#allocation9], 0 }
   0x3   :  { %15 = vsyncpa [#allocation12], 0 }
   0x4   :  { %16 = vsyncpa [#allocation4], 0  ;;  %s3243_s24 = smov [#allocation5]   ;;  %s3244_s26 = smov [#allocation8]  }
   0x5   :  { %s34_s25 = sshll.u32 %s3243_s24, 4  ;;  %s58_s27 = sshll.u32 %s3244_s26, 4  ;;  %s35_s25 = int_to_ptr.vmem [resolvable:$true] %s34_s25  ;;  %s59_s27 = int_to_ptr.vmem [resolvable:$true] %s58_s27 }
   0x6   :  { %s3101_s28 = scalar_lea.vmem %s35_s25, 1024  ;;  %p3106_p1 = scmp.lt.s32.totalorder %s35_s25, %s35_s25 }
   0x7   :  { %p3102_p0 = scmp.ne.s32.totalorder %s35_s25, %s3101_s28  ;;  %p3107_p2 = scmp.lt.s32.totalorder %s3101_s28, %s3101_s28 }
   0x9   :  { %p3108_p3 = por %p3107_p2, %p3106_p1 }
   0xb   :  { %p3109_p4 = pnand %p3108_p3, %p3102_p0 }
   0xd   :  { %3112 = shalt.err (!%p3109_p4)
}
   0xe   :  { %s3245_s29 = smov 128   ;;  %s3246_s30 = smov 8  }
   0xf   :  { %40 = dma.hbm_to_vmem [thread:$0]  %s3782_s1, 1024, %s35_s25, [#allocation6], %s3245_s29, %s3245_s29, %s3246_s30  }
  0x10   :  { %s3121_s10 = scalar_lea.vmem %s59_s27, 1536  ;;  %p3126_p6 = scmp.lt.s32.totalorder %s59_s27, %s59_s27 }
  0x11   :  { %p3122_p5 = scmp.ne.s32.totalorder %s59_s27, %s3121_s10  ;;  %p3127_p7 = scmp.lt.s32.totalorder %s3121_s10, %s3121_s10 }
  0x13   :  { %p3128_p8 = por %p3127_p7, %p3126_p6 }
  0x15   :  { %p3129_p9 = pnand %p3128_p8, %p3122_p5 }
  0x17   :  { %3132 = shalt.err (!%p3129_p9)
}
  0x18   :  { %64 = dma.hbm_to_vmem [thread:$0]  %s3784_s3, 1536, %s59_s27, [#allocation9], %s3245_s29, %s3245_s29, %s3246_s30  }
  0x19   :  { %s3247_s13 = smov [#allocation2]   ;;  %s3248_s15 = smov [#allocation7]  }
  0x1a   :  { %s22_s14 = sshll.u32 %s3247_s13, 4  ;;  %s46_s16 = sshll.u32 %s3248_s15, 4  ;;  %s23_s14 = int_to_ptr.vmem [resolvable:$true] %s22_s14  ;;  %s47_s16 = int_to_ptr.vmem [resolvable:$true] %s46_s16 }
  0x1b   :  { %s3141_s1 = scalar_lea.vmem %s23_s14, 1024  ;;  %p3146_p11 = scmp.lt.s32.totalorder %s23_s14, %s23_s14 }
  0x1c   :  { %p3142_p10 = scmp.ne.s32.totalorder %s23_s14, %s3141_s1  ;;  %p3147_p12 = scmp.lt.s32.totalorder %s3141_s1, %s3141_s1 }
  0x1e   :  { %p3148_p13 = por %p3147_p12, %p3146_p11 }
  0x20   :  { %p3149_p0 = pnand %p3148_p13, %p3142_p10 }
  0x22   :  { %3152 = shalt.err (!%p3149_p0)
}
  0x23   :  { %28 = dma.hbm_to_vmem [thread:$0]  %s3781_s0, 1024, %s23_s14, [#allocation3], %s3245_s29, %s3245_s29, %s3246_s30  }
  0x24   :  { %s3161_s3 = scalar_lea.vmem %s47_s16, 1536  ;;  %p3166_p2 = scmp.lt.s32.totalorder %s47_s16, %s47_s16 }
  0x25   :  { %p3162_p1 = scmp.ne.s32.totalorder %s47_s16, %s3161_s3  ;;  %p3167_p3 = scmp.lt.s32.totalorder %s3161_s3, %s3161_s3 }
  0x27   :  { %p3168_p4 = por %p3167_p3, %p3166_p2 }
  0x29   :  { %p3169_p5 = pnand %p3168_p4, %p3162_p1 }
  0x2b   :  { %3172 = shalt.err (!%p3169_p5)
}
  0x2c   :  { %52 = dma.hbm_to_vmem [thread:$0]  %s3783_s2, 1536, %s47_s16, [#allocation6], %s3245_s29, %s3245_s29, %s3246_s30  }
  0x2d   :  { %s3249_s21 = smov [#allocation10]  }
  0x2e   :  { %s70_s22 = sshll.u32 %s3249_s21, 4  ;;  %s71_s22 = int_to_ptr.vmem [resolvable:$true] %s70_s22 }
  0x2f   :  { %s3181_s23 = scalar_lea.vmem %s71_s22, 48  ;;  %s3185_s0 = scalar_lea.vmem %s71_s22, 64 }
  0x30   :  { %p3182_p6 = scmp.ne.s32.totalorder %s71_s22, %s3181_s23  ;;  %p3186_p7 = scmp.lt.s32.totalorder %s71_s22, %s71_s22 }
  0x31   :  { %p3187_p8 = scmp.lt.s32.totalorder %s3185_s0, %s3181_s23 }
  0x33   :  { %p3188_p9 = por %p3187_p8, %p3186_p7 }
  0x35   :  { %p3189_p10 = pnand %p3188_p9, %p3182_p6 }
  0x37   :  { %3192 = shalt.err (!%p3189_p10)
}
  0x38   :  { %s3250_s24 = smov 16   ;;  %s3251_s25 = smov 1  }
  0x39   :  { %76 = dma.hbm_to_vmem [thread:$0]  %s3785_s4, 48, %s71_s22, [#allocation9], %s3250_s24, %s3250_s24, %s3251_s25  }
  0x3a   :  { %s3252_s28 = smov [#allocation11]  }
  0x3b   :  { %s82_s8 = sshll.u32 %s3252_s28, 4  ;;  %s83_s8 = int_to_ptr.vmem [resolvable:$true] %s82_s8 }
  0x3c   :  { %s3201_s2 = scalar_lea.vmem %s83_s8, 48  ;;  %s3205_s29 = scalar_lea.vmem %s83_s8, 64 }
  0x3d   :  { %p3202_p11 = scmp.ne.s32.totalorder %s83_s8, %s3201_s2  ;;  %p3206_p12 = scmp.lt.s32.totalorder %s83_s8, %s83_s8 }
  0x3e   :  { %p3207_p13 = scmp.lt.s32.totalorder %s3205_s29, %s3201_s2 }
  0x40   :  { %p3208_p0 = por %p3207_p13, %p3206_p12 }
  0x42   :  { %p3209_p1 = pnand %p3208_p0, %p3202_p11 }
  0x44   :  { %3212 = shalt.err (!%p3209_p1)
}
  0x45   :  { %88 = dma.hbm_to_vmem [thread:$0]  %s3786_s5, 48, %s83_s8, [#allocation12], %s3250_s24, %s3250_s24, %s3251_s25  }
  0x46   :  { %3233 = dma.done.wait [#allocation3], 1024  }
  0x47   :  { %3234 = vsyncadd [#allocation3], 4294966272 }
  0x48   :  { %3235 = dma.done.wait [#allocation6], 2560  }
  0x49   :  { %3236 = vsyncadd [#allocation6], 4294964736 }
  0x4a   :  { %3237 = dma.done.wait [#allocation9], 1584  }
  0x4b   :  { %3238 = vsyncadd [#allocation9], 4294965712 }
  0x4c   :  { %3239 = dma.done.wait [#allocation12], 48  }
  0x4d   :  { %3240 = vsyncadd [#allocation12], 4294967248  ;;  %vm128_vm0 = vcmask 261120   ;;  %v262_v0 = vld [vmem:[#allocation7 + $0x38] sm:$0xff]  ;;  %v261_v1 = vld [vmem:[#allocation7 + $0x30] sm:$0xff]  ;;  %v3253_v11 = vmov 0.0  }
  0x4e   :  { %2692 = vmatprep.subr.mxu1 %v262_v0  ;;  %v3326_v2 = vld [vmem:[#allocation2] sm:$0xff]  ;;  %v260_v3 = vld [vmem:[#allocation7 + $0x28] sm:$0xff]  ;;  %v120_v4 = vld [vmem:[#allocation7 + $0x18] sm:$0xff]  ;;  %vm3254_vm1 = vmmov 0  }
  0x4f   :  { %2693 = vmatpush3.msra.mxu1 %v262_v0  ;;  %2700 = vmatprep.mubr.msk.f32.mxu1 %vm128_vm0, %v3326_v2  ;;  %v119_v5 = vld [vmem:[#allocation7 + $0x10] sm:$0xff]  ;;  %v259_v6 = vld [vmem:[#allocation7 + $0x20] sm:$0xff]  ;;  %v118_v7 = vld [vmem:[#allocation7 + $0x8] sm:$0xff] }
  0x50   :  { %2694 = vmatprep.subr.mxu1 %v261_v1  ;;  %2680 = vmatprep.mubr.msk.f32.mxu0 %vm128_vm0, %v3326_v2  ;;  %v3332_v8 = vld [vmem:[#allocation2 + $0x8] sm:$0xff]  ;;  %v3334_v9 = vld [vmem:[#allocation8 + $0x18] sm:$0xff]  ;;  %v3336_v10 = vld [vmem:[#allocation2 + $0x10] sm:$0xff] }
  0x51   :  { %2695 = vmatpush3.msra.mxu1 %v261_v1  ;;  %2672 = vmatprep.subr.mxu0 %v120_v4  ;;  %v3341_v12 = vld [vmem:[#allocation8 + $0x10] sm:$0xff]  ;;  %v117_v13 = vld [vmem:[#allocation7] sm:$0xff]  ;;  %v3346_v14 = vld [vmem:[#allocation2 + $0x18] sm:$0xff] }
  0x52   :  { %2696 = vmatprep.subr.mxu1 %v260_v3  ;;  %2673 = vmatpush3.msra.mxu0 %v120_v4  ;;  %v3349_v15 = vld [vmem:[#allocation2 + $0x20] sm:$0xff]  ;;  %v3351_v16 = vld [vmem:[#allocation8 + $0x8] sm:$0xff]  ;;  %v3364_v19 = vld [vmem:[#allocation2 + $0x30] sm:$0xff] }
  0x53   :  { %2697 = vmatpush3.msra.mxu1 %v260_v3  ;;  %2674 = vmatprep.subr.mxu0 %v119_v5  ;;  %v3357_v17 = vld [vmem:[#allocation8] sm:$0xff]  ;;  %v3361_v18 = vld [vmem:[#allocation2 + $0x28] sm:$0xff]  ;;  %v380_v20 = vld [vmem:[#allocation7 + $0x58] sm:$0xff] }
  0x54   :  { %2698 = vmatprep.subr.mxu1 %v259_v6  ;;  %2675 = vmatpush3.msra.mxu0 %v119_v5  ;;  %v379_v21 = vld [vmem:[#allocation7 + $0x50] sm:$0xff]  ;;  %v116_v22 = vld [vmem:[#allocation2 + $0x38] sm:$0xff]  ;;  %v378_v23 = vld [vmem:[#allocation7 + $0x48] sm:$0xff] }
  0x55   :  { %2699 = vmatpush3.msra.mxu1 %v259_v6  ;;  %2676 = vmatprep.subr.mxu0 %v118_v7  ;;  %v3385_v24 = vld [vmem:[%s3787_s6] sm:$0xff]  ;;  %v3389_v25 = vld [vmem:[#allocation8 + $0x38] sm:$0xff]  ;;  %v3395_v26 = vld [vmem:[#allocation8 + $0x30] sm:$0xff]  ;;  %s3255_s6 = smov [#allocation13]  }
  0x56   :  { %2701 = vmatmul.mubr.msk.f32.vlgmr.msra.gmra.mxu1 %vm128_vm0, %v3332_v8  ;;  %2732 = vmatprep.subr.mxu1 %v3253_v11  ;;  %v377_v27 = vld [vmem:[#allocation7 + $0x40] sm:$0xff]  ;;  %v3401_v28 = vld [vmem:[#allocation8 + $0x28] sm:$0xff]  ;;  %v3414_v30 = vld [vmem:[#allocation8 + $0x58] sm:$0xff]  ;;  %s2434_s10 = sshll.u32 %s3255_s6, 4  ;;  %s2435_s10 = int_to_ptr.vmem [resolvable:$true] %s2434_s10 }
  0x57   :  { %2733 = vmatpush3.msra.mxu1 %v3334_v9  ;;  %2703 = vmatprep.mubr.msk.f32.mxu1 %vm128_vm0, %v3336_v10  ;;  %v3408_v29 = vld [vmem:[#allocation8 + $0x20] sm:$0xff]  ;;  %v3425_v31 = vld [vmem:[#allocation8 + $0x50] sm:$0xff]  ;;  %v3431_v32 = vld [vmem:[#allocation8 + $0x48] sm:$0xff]  ;;  %s3213_s11 = scalar_lea.vmem %s2435_s10, 128  ;;  %p3218_p3 = scmp.lt.s32.totalorder %s2435_s10, %s2435_s10 }
  0x58   :  { %2734 = vmatprep.subr.mxu1 %v3253_v11  ;;  %2677 = vmatpush3.msra.mxu0 %v118_v7  ;;  %v3438_v33 = vld [vmem:[#allocation8 + $0x40] sm:$0xff]  ;;  %p3214_p2 = scmp.ne.s32.totalorder %s2435_s10, %s3213_s11  ;;  %p3219_p4 = scmp.lt.s32.totalorder %s3213_s11, %s3213_s11 }
  0x59   :  { %2735 = vmatpush3.msra.mxu1 %v3341_v12  ;;  %2678 = vmatprep.subr.mxu0 %v117_v13  ;;  %v2455_v34 = vld [vmem:[#allocation10 + $0x1] ss:$0 sm:$0xff]  ;;  %v2446_v40 = vld [vmem:[#allocation10] ss:$0 sm:$0xff]  ;;  %v3488_v56 = vld [vmem:[#allocation11] ss:$0 sm:$0xff] }
  0x5a   :  { %2704 = vmatmul.mubr.msk.f32.gmra.mxu1 %vm128_vm0, %v3346_v14  ;;  %2736 = vmatprep.subr.mxu1 %v3253_v11  ;;  %p3220_p5 = por %p3219_p4, %p3218_p3 }
  0x5b   :  { %2706 = vmatprep.mubr.msk.f32.mxu1 %vm128_vm0, %v3349_v15  ;;  %2737 = vmatpush3.msra.mxu1 %v3351_v16 }
  0x5c   :  { %2679 = vmatpush3.msra.mxu0 %v117_v13  ;;  %2738 = vmatprep.subr.mxu1 %v3253_v11  ;;  %p3221_p6 = pnand %p3220_p5, %p3214_p2 }
  0x5d   :  { %2681 = vmatmul.mubr.msk.f32.vlgmr.msra.gmra.mxu0 %vm128_vm0, %v3332_v8  ;;  %2739 = vmatpush3.msra.mxu1 %v3357_v17 }
  0x5e   :  { %2707 = vmatmul.mubr.msk.f32.gmra.mxu1 %vm128_vm0, %v3361_v18  ;;  %2743 = vmatprep.subr.mxu1 %v3253_v11 }
  0x5f   :  { %2709 = vmatprep.mubr.msk.f32.mxu1 %vm128_vm0, %v3364_v19  ;;  %2712 = vmatprep.subr.mxu0 %v380_v20 }
  0x60   :  { %2713 = vmatpush3.msra.mxu0 %v380_v20  ;;  %2683 = vmatprep.mubr.msk.f32.mxu0 %vm128_vm0, %v3336_v10 }
  0x61   :  { %2684 = vmatmul.mubr.msk.f32.gmra.mxu0 %vm128_vm0, %v3346_v14  ;;  %2714 = vmatprep.subr.mxu0 %v379_v21 }
  0x62   :  { %2710 = vmatmul.mubr.msk.f32.gmra.mxu1 %vm128_vm0, %v116_v22  ;;  %2715 = vmatpush3.msra.mxu0 %v379_v21 }
  0x63   :  { %2740 = vmatprep.mubr.msk.f32.mxu1 %vm3254_vm1, %v3253_v11  ;;  %2686 = vmatprep.mubr.msk.f32.mxu0 %vm128_vm0, %v3349_v15 }
  0x64   :  { %2716 = vmatprep.subr.mxu0 %v378_v23 }
  0x65   :  { %2687 = vmatmul.mubr.msk.f32.gmra.mxu0 %vm128_vm0, %v3361_v18 }
  0x66   :  { %2741 = vmatmul.mubr.msk.f32.vlgmr.msra.gmra.mxu1 %vm128_vm0, %v3385_v24  ;;  %2717 = vmatpush3.msra.mxu0 %v378_v23 }
  0x67   :  { %2744 = vmatpush3.msra.mxu1 %v3389_v25  ;;  %2751 = vmatprep.mubr.msk.f32.mxu1 %vm3254_vm1, %v3253_v11 }
  0x68   :  { %2745 = vmatprep.subr.mxu1 %v3253_v11  ;;  %2689 = vmatprep.mubr.msk.f32.mxu0 %vm128_vm0, %v3364_v19 }
  0x69   :  { %2746 = vmatpush3.msra.mxu1 %v3395_v26  ;;  %2690 = vmatmul.mubr.msk.f32.gmra.mxu0 %vm128_vm0, %v116_v22 }
  0x6a   :  { %2747 = vmatprep.subr.mxu1 %v3253_v11  ;;  %2718 = vmatprep.subr.mxu0 %v377_v27 }
  0x6b   :  { %2748 = vmatpush3.msra.mxu1 %v3401_v28  ;;  %2719 = vmatpush3.msra.mxu0 %v377_v27 }
  0x6c   :  { %2749 = vmatprep.subr.mxu1 %v3253_v11  ;;  %2720 = vmatprep.mubr.msk.f32.mxu0 %vm128_vm0, %v3326_v2 }
  0x6d   :  { %2750 = vmatpush3.msra.mxu1 %v3408_v29  ;;  %2721 = vmatmul.mubr.msk.f32.vlgmr.msra.gmra.mxu0 %vm128_vm0, %v3332_v8  ;;  %v2464_v8 = vld [vmem:[#allocation10 + $0x2] ss:$0 sm:$0xff] }
  0x6e   :  { %2752 = vmatmul.mubr.msk.f32.vlgmr.msra.gmra.mxu1 %vm128_vm0, %v3385_v24  ;;  %2754 = vmatprep.subr.mxu0 %v3253_v11 }
  0x6f   :  { %2755 = vmatpush3.msra.mxu0 %v3414_v30  ;;  %2723 = vmatprep.mubr.msk.f32.mxu0 %vm128_vm0, %v3336_v10  ;;  %v3501_v10 = vld [vmem:[#allocation11 + $0x1] ss:$0 sm:$0xff] }
  0x70   :  { %2756 = vmatprep.subr.mxu0 %v3253_v11  ;;  %2765 = vmatprep.subr.mxu1 %v3253_v11 }
  0x71   :  { %2724 = vmatmul.mubr.msk.f32.gmra.mxu0 %vm128_vm0, %v3346_v14  ;;  %2766 = vmatpush3.msra.mxu1 %v3334_v9 }
  0x72   :  { %2757 = vmatpush3.msra.mxu0 %v3425_v31  ;;  %2726 = vmatprep.mubr.msk.f32.mxu0 %vm128_vm0, %v3349_v15 }
  0x73   :  { %2758 = vmatprep.subr.mxu0 %v3253_v11  ;;  %2767 = vmatprep.subr.mxu1 %v3253_v11 }
  0x74   :  { %2759 = vmatpush3.msra.mxu0 %v3431_v32  ;;  %2768 = vmatpush3.msra.mxu1 %v3341_v12 }
  0x75   :  { %2727 = vmatmul.mubr.msk.f32.gmra.mxu0 %vm128_vm0, %v3361_v18  ;;  %2760 = vmatprep.subr.mxu0 %v3253_v11 }
  0x76   :  { %2729 = vmatprep.mubr.msk.f32.mxu0 %vm128_vm0, %v3364_v19  ;;  %2761 = vmatpush3.msra.mxu0 %v3438_v33 }
  0x77   :  { %2776 = vmatprep.subr.mxu0 %v3253_v11  ;;  %2769 = vmatprep.subr.mxu1 %v3253_v11 }
  0x78   :  { %2770 = vmatpush3.msra.mxu1 %v3351_v16  ;;  %2773 = vmatprep.mubr.msk.f32.mxu1 %vm3254_vm1, %v3253_v11 }
  0x79   :  { %2730 = vmatmul.mubr.msk.f32.gmra.mxu0 %vm128_vm0, %v116_v22  ;;  %2771 = vmatprep.subr.mxu1 %v3253_v11 }
  0x7a   :  { %2762 = vmatprep.mubr.msk.f32.mxu0 %vm3254_vm1, %v3253_v11  ;;  %2772 = vmatpush3.msra.mxu1 %v3357_v17 }
  0x7b   :  { %2787 = vmatprep.subr.mxu1 %v3253_v11 }
  0x7d   :  { %2763 = vmatmul.mubr.msk.f32.vlgmr.msra.gmra.mxu0 %vm128_vm0, %v3385_v24 }
  0x7e   :  { %2777 = vmatpush3.msra.mxu0 %v3389_v25  ;;  %2784 = vmatprep.mubr.msk.f32.mxu0 %vm3254_vm1, %v3253_v11 }
  0x7f   :  { %2778 = vmatprep.subr.mxu0 %v3253_v11 }
  0x80   :  { %2779 = vmatpush3.msra.mxu0 %v3395_v26 }
  0x81   :  { %2780 = vmatprep.subr.mxu0 %v3253_v11 }
  0x82   :  { %2781 = vmatpush3.msra.mxu0 %v3401_v28 }
  0x83   :  { %2782 = vmatprep.subr.mxu0 %v3253_v11 }
  0x84   :  { %2783 = vmatpush3.msra.mxu0 %v3408_v29 }
  0x85   :  { %2798 = vmatprep.subr.mxu0 %v3253_v11 }
 0x116   :  { %v2702_v35 = vpop.f32.mrf.mxu1 }
 0x117   :  { %v3472_v36 = vadd.f32 %v2702_v35, %v2455_v34 }
 0x118   :  { %v337_v37 = vpop.f32.mrf.mxu1 }
 0x119   :  { %v338_v19 = vadd.f32 %v2455_v34, %v337_v37 }
 0x11a   :  { %v2705_v38 = vpop.f32.mrf.mxu1 }
 0x11b   :  { %v3474_v39 = vadd.f32 %v2705_v38, %v2455_v34 }
 0x11c   :  { %v347_v41 = vpop.f32.mrf.mxu1 }
 0x11d   :  { %v3476_v42 = vadd.f32 %v2455_v34, %v347_v41  ;;  %v2682_v43 = vpop.f32.mrf.mxu0 }
 0x11e   :  { %v2708_v44 = vpop.f32.mrf.mxu1  ;;  %v3478_v45 = vadd.f32 %v2682_v43, %v2446_v40 }
 0x11f   :  { %v3480_v46 = vadd.f32 %v2708_v44, %v2455_v34  ;;  %v219_v47 = vpop.f32.mrf.mxu0 }
 0x120   :  { %v357_v48 = vpop.f32.mrf.mxu1  ;;  %v220_v62 = vadd.f32 %v2446_v40, %v219_v47 }
 0x121   :  { %v3482_v49 = vadd.f32 %v2455_v34, %v357_v48  ;;  %v2685_v50 = vpop.f32.mrf.mxu0 }
 0x122   :  { %v2711_v51 = vpop.f32.mrf.mxu1  ;;  %v3484_v52 = vadd.f32 %v2685_v50, %v2446_v40 }
 0x123   :  { %v3486_v53 = vadd.f32 %v2711_v51, %v2455_v34  ;;  %v229_v54 = vpop.f32.mrf.mxu0 }
 0x124   :  { %v367_v55 = vpop.f32.mrf.mxu1  ;;  %v3490_v57 = vadd.f32 %v2446_v40, %v229_v54 }
 0x125   :  { %v3492_v58 = vadd.f32 %v2455_v34, %v367_v55  ;;  %v2688_v59 = vpop.f32.mrf.mxu0 }
 0x126   :  { %v589_v60 = vpop.f32.mrf.mxu1  ;;  %v3494_v61 = vadd.f32 %v2688_v59, %v2446_v40 }
 0x127   :  { %v590_v63 = vadd.f32 %v3488_v56, %v589_v60  ;;  %v239_v0 = vpop.f32.mrf.mxu0 }
 0x128   :  { %v2742_v1 = vpop.f32.mrf.mxu1  ;;  %v3497_v2 = vadd.f32 %v2446_v40, %v239_v0  ;;  %v3520_v0 = vld [vmem:[#allocation11 + $0x2] ss:$0 sm:$0xff] }
 0x129   :  { %v745_v3 = vadd.f32 %v590_v63, %v220_v62  ;;  %v2691_v4 = vpop.f32.mrf.mxu0 }
 0x12a   :  { %v3499_v5 = vadd.f32 %v2691_v4, %v2446_v40 }
 0x12b   :  { %v2479_v6 = vmul.f32 -1.442695, %v745_v3  ;;  %v249_v7 = vpop.f32.mrf.mxu0 }
 0x12c   :  { %v3503_v13 = vadd.f32 %v2446_v40, %v249_v7 }
 0x12d   :  { %3009 = vpow2.f32 %v2479_v6  ;;  %v2722_v14 = vpop.f32.mrf.mxu0 }
 0x12e   :  { %v665_v15 = vpop.f32.mrf.mxu1  ;;  %v3505_v18 = vadd.f32 %v2722_v14, %v2464_v8 }
 0x12f   :  { %v666_v20 = vadd.f32 %v3501_v10, %v665_v15  ;;  %v455_v21 = vpop.f32.mrf.mxu0  ;;  %v762_v15 = vld [vmem:[#allocation5] sm:$0xff] }
 0x130   :  { %v2753_v22 = vpop.f32.mrf.mxu1  ;;  %v456_v4 = vadd.f32 %v2464_v8, %v455_v21 }
 0x131   :  { %v752_v23 = vadd.f32 %v666_v20, %v338_v19  ;;  %v2725_v27 = vpop.f32.mrf.mxu0 }
 0x132   :  { %v3508_v35 = vadd.f32 %v2725_v27, %v2464_v8 }
 0x133   :  { %v2480_v38 = vmul.f32 -1.442695, %v752_v23  ;;  %v465_v41 = vpop.f32.mrf.mxu0 }
 0x134   :  { %v3510_v43 = vadd.f32 %v2464_v8, %v465_v41 }
 0x135   :  { %3011 = vpow2.f32 %v2480_v38  ;;  %v2728_v40 = vpop.f32.mrf.mxu0 }
 0x136   :  { %v3512_v44 = vadd.f32 %v2728_v40, %v2464_v8 }
 0x137   :  { %v475_v47 = vpop.f32.mrf.mxu0 }
 0x138   :  { %v3514_v48 = vadd.f32 %v2464_v8, %v475_v47 }
 0x139   :  { %v2731_v34 = vpop.f32.mrf.mxu0 }
 0x13a   :  { %v3010_v37 = vpop.eup %3009  ;;  %v3516_v50 = vadd.f32 %v2731_v34, %v2464_v8 }
 0x13b   :  { %v749_v51 = vadd.f32 1.0, %v3010_v37  ;;  %v485_v54 = vpop.f32.mrf.mxu0 }
 0x13c   :  { %v3518_v55 = vadd.f32 %v2464_v8, %v485_v54 }
 0x13d   :  { %3013 = vrcp.f32 %v749_v51  ;;  %v741_v59 = vpop.f32.mrf.mxu0 }
 0x13e   :  { %v742_v1 = vadd.f32 %v3520_v0, %v741_v59 }
 0x13f   :  { %v2764_v60 = vpop.f32.mrf.mxu0 }
 0x142   :  { %v3012_v62 = vpop.eup %3011 }
 0x143   :  { %v756_v63 = vadd.f32 1.0, %v3012_v62 }
 0x145   :  { %3015 = vrcp.f32 %v756_v63 }
 0x14a   :  { %v3014_v3 = vpop.eup %3013 }
 0x14b   :  { %v759_v6 = vmul.f32 %v3014_v3, %v742_v1 }
 0x14d   :  { %v760_v7 = vadd.f32 %v759_v6, %v456_v4 }
 0x14f   :  { %3017 = vtanh.f32 %v760_v7 }
 0x152   :  { %v3016_v14 = vpop.eup %3015 }
 0x153   :  { %v763_v19 = vmul.f32 %v3016_v14, %v762_v15  ;;  %v999_v14 = vld [vmem:[#allocation5 + $0x8] sm:$0xff] }
 0x155   :  { %v764_v20 = vsub.f32 1.0, %v763_v19 }
 0x157   :  { %v765_v23 = vmul.f32 %v764_v20, %v3385_v24 }
 0x15c   :  { %v3018_v22 = vpop.eup %3017 }
 0x15d   :  { %v766_v27 = vmul.f32 %v3018_v22, %v763_v19 }
 0x15f   :  { %v767_v38 = vadd.f32 %v766_v27, %v765_v23 }
 0x161   :  { %2774 = vmatmul.mubr.msk.f32.vlgmr.msra.gmra.mxu1 %vm128_vm0, %v767_v38  ;;  %2785 = vmatmul.mubr.msk.f32.vlgmr.msra.gmra.mxu0 %vm128_vm0, %v767_v38 }
 0x162   :  { %2788 = vmatpush3.msra.mxu1 %v3414_v30  ;;  %2795 = vmatprep.mubr.msk.f32.mxu1 %vm3254_vm1, %v3253_v11 }
 0x163   :  { %2789 = vmatprep.subr.mxu1 %v3253_v11  ;;  %2799 = vmatpush3.msra.mxu0 %v3334_v9 }
 0x164   :  { %2790 = vmatpush3.msra.mxu1 %v3425_v31  ;;  %2800 = vmatprep.subr.mxu0 %v3253_v11 }
 0x165   :  { %2791 = vmatprep.subr.mxu1 %v3253_v11  ;;  %2801 = vmatpush3.msra.mxu0 %v3341_v12 }
 0x166   :  { %2792 = vmatpush3.msra.mxu1 %v3431_v32  ;;  %2802 = vmatprep.subr.mxu0 %v3253_v11 }
 0x167   :  { %2793 = vmatprep.subr.mxu1 %v3253_v11  ;;  %2803 = vmatpush3.msra.mxu0 %v3351_v16 }
 0x168   :  { %2794 = vmatpush3.msra.mxu1 %v3438_v33  ;;  %2804 = vmatprep.subr.mxu0 %v3253_v11 }
 0x169   :  { %2796 = vmatmul.mubr.msk.f32.vlgmr.msra.gmra.mxu1 %vm128_vm0, %v767_v38  ;;  %2809 = vmatprep.subr.mxu1 %v3253_v11 }
 0x16a   :  { %2810 = vmatpush3.msra.mxu1 %v3389_v25  ;;  %2805 = vmatpush3.msra.mxu0 %v3357_v17 }
 0x16b   :  { %2811 = vmatprep.subr.mxu1 %v3253_v11  ;;  %2806 = vmatprep.mubr.msk.f32.mxu0 %vm3254_vm1, %v3253_v11 }
 0x16c   :  { %2812 = vmatpush3.msra.mxu1 %v3395_v26  ;;  %2817 = vmatprep.mubr.msk.f32.mxu1 %vm3254_vm1, %v3253_v11 }
 0x16d   :  { %2813 = vmatprep.subr.mxu1 %v3253_v11  ;;  %2820 = vmatprep.subr.mxu0 %v3253_v11 }
 0x16e   :  { %2814 = vmatpush3.msra.mxu1 %v3401_v28 }
 0x16f   :  { %2815 = vmatprep.subr.mxu1 %v3253_v11 }
 0x170   :  { %2816 = vmatpush3.msra.mxu1 %v3408_v29 }
 0x171   :  { %2831 = vmatprep.subr.mxu1 %v3253_v11 }
 0x221   :  { %v837_v24 = vpop.f32.mrf.mxu1  ;;  %v907_v8 = vpop.f32.mrf.mxu0 }
 0x222   :  { %v838_v21 = vadd.f32 %v3488_v56, %v837_v24  ;;  %v908_v41 = vadd.f32 %v3501_v10, %v907_v8 }
 0x223   :  { %v2775_v40 = vpop.f32.mrf.mxu1  ;;  %v2786_v47 = vpop.f32.mrf.mxu0 }
 0x224   :  { %v981_v34 = vadd.f32 %v838_v21, %v3478_v45  ;;  %v988_v37 = vadd.f32 %v908_v41, %v3472_v36 }
 0x226   :  { %v2484_v51 = vmul.f32 -1.442695, %v981_v34  ;;  %v2485_v54 = vmul.f32 -1.442695, %v988_v37 }
 0x228   :  { %3019 = vpow2.f32 %v2484_v51 }
 0x229   :  { %v977_v59 = vpop.f32.mrf.mxu1  ;;  %3021 = vpow2.f32 %v2485_v54 }
 0x22a   :  { %v978_v4 = vadd.f32 %v3520_v0, %v977_v59 }
 0x22b   :  { %v2797_v60 = vpop.f32.mrf.mxu1 }
 0x235   :  { %v3020_v62 = vpop.eup %3019 }
 0x236   :  { %v985_v63 = vadd.f32 1.0, %v3020_v62  ;;  %v3022_v1 = vpop.eup %3021 }
 0x237   :  { %v992_v3 = vadd.f32 1.0, %v3022_v1 }
 0x238   :  { %3023 = vrcp.f32 %v985_v63 }
 0x239   :  { %3025 = vrcp.f32 %v992_v3 }
 0x245   :  { %v3024_v6 = vpop.eup %3023 }
 0x246   :  { %v995_v7 = vmul.f32 %v3024_v6, %v978_v4  ;;  %v3026_v36 = vpop.eup %3025  ;;  %v1236_v6 = vld [vmem:[#allocation5 + $0x10] sm:$0xff] }
 0x247   :  { %v1000_v15 = vmul.f32 %v3026_v36, %v999_v14 }
 0x248   :  { %v996_v45 = vadd.f32 %v995_v7, %v3505_v18 }
 0x249   :  { %v1001_v19 = vsub.f32 1.0, %v1000_v15 }
 0x24a   :  { %3027 = vtanh.f32 %v996_v45 }
 0x24b   :  { %v1002_v22 = vmul.f32 %v1001_v19, %v767_v38 }
 0x257   :  { %v3028_v20 = vpop.eup %3027 }
 0x258   :  { %v1003_v23 = vmul.f32 %v3028_v20, %v1000_v15 }
 0x25a   :  { %v1004_v27 = vadd.f32 %v1003_v23, %v1002_v22 }
 0x25c   :  { %2807 = vmatmul.mubr.msk.f32.vlgmr.msra.gmra.mxu0 %vm128_vm0, %v1004_v27  ;;  %2818 = vmatmul.mubr.msk.f32.vlgmr.msra.gmra.mxu1 %vm128_vm0, %v1004_v27 }
 0x25d   :  { %2821 = vmatpush3.msra.mxu0 %v3414_v30  ;;  %2828 = vmatprep.mubr.msk.f32.mxu0 %vm3254_vm1, %v3253_v11 }
 0x25e   :  { %2822 = vmatprep.subr.mxu0 %v3253_v11  ;;  %2832 = vmatpush3.msra.mxu1 %v3334_v9 }
 0x25f   :  { %2823 = vmatpush3.msra.mxu0 %v3425_v31  ;;  %2833 = vmatprep.subr.mxu1 %v3253_v11 }
 0x260   :  { %2824 = vmatprep.subr.mxu0 %v3253_v11  ;;  %2834 = vmatpush3.msra.mxu1 %v3341_v12 }
 0x261   :  { %2825 = vmatpush3.msra.mxu0 %v3431_v32  ;;  %2835 = vmatprep.subr.mxu1 %v3253_v11 }
 0x262   :  { %2826 = vmatprep.subr.mxu0 %v3253_v11  ;;  %2836 = vmatpush3.msra.mxu1 %v3351_v16 }
 0x263   :  { %2827 = vmatpush3.msra.mxu0 %v3438_v33  ;;  %2837 = vmatprep.subr.mxu1 %v3253_v11 }
 0x264   :  { %2829 = vmatmul.mubr.msk.f32.vlgmr.msra.gmra.mxu0 %vm128_vm0, %v1004_v27  ;;  %2842 = vmatprep.subr.mxu0 %v3253_v11 }
 0x265   :  { %2843 = vmatpush3.msra.mxu0 %v3389_v25  ;;  %2838 = vmatpush3.msra.mxu1 %v3357_v17 }
 0x266   :  { %2844 = vmatprep.subr.mxu0 %v3253_v11  ;;  %2839 = vmatprep.mubr.msk.f32.mxu1 %vm3254_vm1, %v3253_v11 }
 0x267   :  { %2845 = vmatpush3.msra.mxu0 %v3395_v26  ;;  %2850 = vmatprep.mubr.msk.f32.mxu0 %vm3254_vm1, %v3253_v11 }
 0x268   :  { %2846 = vmatprep.subr.mxu0 %v3253_v11  ;;  %2853 = vmatprep.subr.mxu1 %v3253_v11 }
 0x269   :  { %2847 = vmatpush3.msra.mxu0 %v3401_v28 }
 0x26a   :  { %2848 = vmatprep.subr.mxu0 %v3253_v11 }
 0x26b   :  { %2849 = vmatpush3.msra.mxu0 %v3408_v29 }
 0x26c   :  { %2864 = vmatprep.subr.mxu0 %v3253_v11 }
 0x31c   :  { %v1074_v18 = vpop.f32.mrf.mxu0  ;;  %v1144_v38 = vpop.f32.mrf.mxu1 }
 0x31d   :  { %v1075_v24 = vadd.f32 %v3488_v56, %v1074_v18  ;;  %v1145_v8 = vadd.f32 %v3501_v10, %v1144_v38 }
 0x31e   :  { %v2808_v21 = vpop.f32.mrf.mxu0  ;;  %v2819_v41 = vpop.f32.mrf.mxu1 }
 0x31f   :  { %v1218_v40 = vadd.f32 %v1075_v24, %v3490_v57  ;;  %v1225_v47 = vadd.f32 %v1145_v8, %v3476_v42 }
 0x321   :  { %v2489_v34 = vmul.f32 -1.442695, %v1218_v40  ;;  %v2490_v37 = vmul.f32 -1.442695, %v1225_v47 }
 0x323   :  { %3029 = vpow2.f32 %v2489_v34 }
 0x324   :  { %v1214_v51 = vpop.f32.mrf.mxu0  ;;  %3031 = vpow2.f32 %v2490_v37 }
 0x325   :  { %v1215_v1 = vadd.f32 %v3520_v0, %v1214_v51 }
 0x326   :  { %v2830_v54 = vpop.f32.mrf.mxu0 }
 0x330   :  { %v3030_v59 = vpop.eup %3029 }
 0x331   :  { %v1222_v60 = vadd.f32 1.0, %v3030_v59  ;;  %v3032_v62 = vpop.eup %3031 }
 0x332   :  { %v1229_v63 = vadd.f32 1.0, %v3032_v62  ;;  %v1473_v62 = vld [vmem:[#allocation5 + $0x18] sm:$0xff] }
 0x333   :  { %3033 = vrcp.f32 %v1222_v60 }
 0x334   :  { %3035 = vrcp.f32 %v1229_v63 }
 0x340   :  { %v3034_v3 = vpop.eup %3033 }
 0x341   :  { %v1232_v4 = vmul.f32 %v3034_v3, %v1215_v1  ;;  %v3036_v42 = vpop.eup %3035 }
 0x342   :  { %v1237_v7 = vmul.f32 %v3036_v42, %v1236_v6 }
 0x343   :  { %v1233_v57 = vadd.f32 %v1232_v4, %v3510_v43 }
 0x344   :  { %v1238_v45 = vsub.f32 1.0, %v1237_v7 }
 0x345   :  { %3037 = vtanh.f32 %v1233_v57 }
 0x346   :  { %v1239_v14 = vmul.f32 %v1238_v45, %v1004_v27 }
 0x352   :  { %v3038_v36 = vpop.eup %3037 }
 0x353   :  { %v1240_v15 = vmul.f32 %v3038_v36, %v1237_v7 }
 0x355   :  { %v1241_v19 = vadd.f32 %v1240_v15, %v1239_v14 }
 0x357   :  { %2840 = vmatmul.mubr.msk.f32.vlgmr.msra.gmra.mxu1 %vm128_vm0, %v1241_v19  ;;  %2851 = vmatmul.mubr.msk.f32.vlgmr.msra.gmra.mxu0 %vm128_vm0, %v1241_v19 }
 0x358   :  { %2854 = vmatpush3.msra.mxu1 %v3414_v30  ;;  %2861 = vmatprep.mubr.msk.f32.mxu1 %vm3254_vm1, %v3253_v11 }
 0x359   :  { %2855 = vmatprep.subr.mxu1 %v3253_v11  ;;  %2865 = vmatpush3.msra.mxu0 %v3334_v9 }
 0x35a   :  { %2856 = vmatpush3.msra.mxu1 %v3425_v31  ;;  %2866 = vmatprep.subr.mxu0 %v3253_v11 }
 0x35b   :  { %2857 = vmatprep.subr.mxu1 %v3253_v11  ;;  %2867 = vmatpush3.msra.mxu0 %v3341_v12 }
 0x35c   :  { %2858 = vmatpush3.msra.mxu1 %v3431_v32  ;;  %2868 = vmatprep.subr.mxu0 %v3253_v11 }
 0x35d   :  { %2859 = vmatprep.subr.mxu1 %v3253_v11  ;;  %2869 = vmatpush3.msra.mxu0 %v3351_v16 }
 0x35e   :  { %2860 = vmatpush3.msra.mxu1 %v3438_v33  ;;  %2870 = vmatprep.subr.mxu0 %v3253_v11 }
 0x35f   :  { %2862 = vmatmul.mubr.msk.f32.vlgmr.msra.gmra.mxu1 %vm128_vm0, %v1241_v19  ;;  %2875 = vmatprep.subr.mxu1 %v3253_v11 }
 0x360   :  { %2876 = vmatpush3.msra.mxu1 %v3389_v25  ;;  %2871 = vmatpush3.msra.mxu0 %v3357_v17 }
 0x361   :  { %2877 = vmatprep.subr.mxu1 %v3253_v11  ;;  %2872 = vmatprep.mubr.msk.f32.mxu0 %vm3254_vm1, %v3253_v11 }
 0x362   :  { %2878 = vmatpush3.msra.mxu1 %v3395_v26  ;;  %2883 = vmatprep.mubr.msk.f32.mxu1 %vm3254_vm1, %v3253_v11 }
 0x363   :  { %2879 = vmatprep.subr.mxu1 %v3253_v11  ;;  %2886 = vmatprep.subr.mxu0 %v3253_v11 }
 0x364   :  { %2880 = vmatpush3.msra.mxu1 %v3401_v28 }
 0x365   :  { %2881 = vmatprep.subr.mxu1 %v3253_v11 }
 0x366   :  { %2882 = vmatpush3.msra.mxu1 %v3408_v29 }
 0x367   :  { %2897 = vmatprep.subr.mxu1 %v3253_v11 }
 0x417   :  { %v1311_v43 = vpop.f32.mrf.mxu1  ;;  %v1381_v20 = vpop.f32.mrf.mxu0 }
 0x418   :  { %v1312_v22 = vadd.f32 %v3488_v56, %v1311_v43  ;;  %v1382_v23 = vadd.f32 %v3501_v10, %v1381_v20 }
 0x419   :  { %v2841_v27 = vpop.f32.mrf.mxu1  ;;  %v2852_v18 = vpop.f32.mrf.mxu0 }
 0x41a   :  { %v1455_v38 = vadd.f32 %v1312_v22, %v3484_v52  ;;  %v1462_v24 = vadd.f32 %v1382_v23, %v3474_v39 }
 0x41c   :  { %v2494_v8 = vmul.f32 -1.442695, %v1455_v38  ;;  %v2495_v21 = vmul.f32 -1.442695, %v1462_v24 }
 0x41e   :  { %3039 = vpow2.f32 %v2494_v8 }
 0x41f   :  { %v1451_v41 = vpop.f32.mrf.mxu1  ;;  %3041 = vpow2.f32 %v2495_v21 }
 0x420   :  { %v1452_v54 = vadd.f32 %v3520_v0, %v1451_v41 }
 0x421   :  { %v2863_v40 = vpop.f32.mrf.mxu1 }
 0x422   :  { %v1710_v40 = vld [vmem:[#allocation5 + $0x20] sm:$0xff] }
 0x42b   :  { %v3040_v47 = vpop.eup %3039 }
 0x42c   :  { %v1459_v34 = vadd.f32 1.0, %v3040_v47  ;;  %v3042_v37 = vpop.eup %3041 }
 0x42d   :  { %v1466_v51 = vadd.f32 1.0, %v3042_v37 }
 0x42e   :  { %3043 = vrcp.f32 %v1459_v34 }
 0x42f   :  { %3045 = vrcp.f32 %v1466_v51 }
 0x43b   :  { %v3044_v59 = vpop.eup %3043 }
 0x43c   :  { %v1469_v60 = vmul.f32 %v3044_v59, %v1452_v54  ;;  %v3046_v39 = vpop.eup %3045 }
 0x43d   :  { %v1474_v63 = vmul.f32 %v3046_v39, %v1473_v62 }
 0x43e   :  { %v1470_v52 = vadd.f32 %v1469_v60, %v3508_v35 }
 0x43f   :  { %v1475_v1 = vsub.f32 1.0, %v1474_v63 }
 0x440   :  { %3047 = vtanh.f32 %v1470_v52 }
 0x441   :  { %v1476_v4 = vmul.f32 %v1475_v1, %v1241_v19 }
 0x44d   :  { %v3048_v3 = vpop.eup %3047 }
 0x44e   :  { %v1477_v57 = vmul.f32 %v3048_v3, %v1474_v63 }
 0x450   :  { %v1478_v42 = vadd.f32 %v1477_v57, %v1476_v4 }
 0x452   :  { %2873 = vmatmul.mubr.msk.f32.vlgmr.msra.gmra.mxu0 %vm128_vm0, %v1478_v42  ;;  %2884 = vmatmul.mubr.msk.f32.vlgmr.msra.gmra.mxu1 %vm128_vm0, %v1478_v42 }
 0x453   :  { %2887 = vmatpush3.msra.mxu0 %v3414_v30  ;;  %2894 = vmatprep.mubr.msk.f32.mxu0 %vm3254_vm1, %v3253_v11 }
 0x454   :  { %2888 = vmatprep.subr.mxu0 %v3253_v11  ;;  %2898 = vmatpush3.msra.mxu1 %v3334_v9 }
 0x455   :  { %2889 = vmatpush3.msra.mxu0 %v3425_v31  ;;  %2899 = vmatprep.subr.mxu1 %v3253_v11 }
 0x456   :  { %2890 = vmatprep.subr.mxu0 %v3253_v11  ;;  %2900 = vmatpush3.msra.mxu1 %v3341_v12 }
 0x457   :  { %2891 = vmatpush3.msra.mxu0 %v3431_v32  ;;  %2901 = vmatprep.subr.mxu1 %v3253_v11 }
 0x458   :  { %2892 = vmatprep.subr.mxu0 %v3253_v11  ;;  %2902 = vmatpush3.msra.mxu1 %v3351_v16 }
 0x459   :  { %2893 = vmatpush3.msra.mxu0 %v3438_v33  ;;  %2903 = vmatprep.subr.mxu1 %v3253_v11 }
 0x45a   :  { %2895 = vmatmul.mubr.msk.f32.vlgmr.msra.gmra.mxu0 %vm128_vm0, %v1478_v42  ;;  %2908 = vmatprep.subr.mxu0 %v3253_v11 }
 0x45b   :  { %2909 = vmatpush3.msra.mxu0 %v3389_v25  ;;  %2904 = vmatpush3.msra.mxu1 %v3357_v17 }
 0x45c   :  { %2910 = vmatprep.subr.mxu0 %v3253_v11  ;;  %2905 = vmatprep.mubr.msk.f32.mxu1 %vm3254_vm1, %v3253_v11 }
 0x45d   :  { %2911 = vmatpush3.msra.mxu0 %v3395_v26  ;;  %2916 = vmatprep.mubr.msk.f32.mxu0 %vm3254_vm1, %v3253_v11 }
 0x45e   :  { %2912 = vmatprep.subr.mxu0 %v3253_v11  ;;  %2919 = vmatprep.subr.mxu1 %v3253_v11 }
 0x45f   :  { %2913 = vmatpush3.msra.mxu0 %v3401_v28 }
 0x460   :  { %2914 = vmatprep.subr.mxu0 %v3253_v11 }
 0x461   :  { %2915 = vmatpush3.msra.mxu0 %v3408_v29 }
 0x462   :  { %2930 = vmatprep.subr.mxu0 %v3253_v11 }
 0x512   :  { %v1548_v35 = vpop.f32.mrf.mxu0  ;;  %v1618_v6 = vpop.f32.mrf.mxu1 }
 0x513   :  { %v1549_v7 = vadd.f32 %v3488_v56, %v1548_v35  ;;  %v1619_v45 = vadd.f32 %v3501_v10, %v1618_v6 }
 0x514   :  { %v2874_v36 = vpop.f32.mrf.mxu0  ;;  %v2885_v14 = vpop.f32.mrf.mxu1 }
 0x515   :  { %v1692_v15 = vadd.f32 %v1549_v7, %v3497_v2  ;;  %v1699_v19 = vadd.f32 %v1619_v45, %v3482_v49  ;;  %v1947_v36 = vld [vmem:[#allocation5 + $0x28] sm:$0xff] }
 0x517   :  { %v2499_v43 = vmul.f32 -1.442695, %v1692_v15  ;;  %v2500_v20 = vmul.f32 -1.442695, %v1699_v19 }
 0x519   :  { %3049 = vpow2.f32 %v2499_v43 }
 0x51a   :  { %v1688_v22 = vpop.f32.mrf.mxu0  ;;  %3051 = vpow2.f32 %v2500_v20 }
 0x51b   :  { %v1689_v8 = vadd.f32 %v3520_v0, %v1688_v22 }
 0x51c   :  { %v2896_v23 = vpop.f32.mrf.mxu0 }
 0x51d   :  { %v3090_v23 = vld [vmem:[#allocation8 + $0x10] sm:$0xff] }
 0x526   :  { %v3050_v27 = vpop.eup %3049 }
 0x527   :  { %v1696_v18 = vadd.f32 1.0, %v3050_v27  ;;  %v3052_v38 = vpop.eup %3051  ;;  %v3091_v27 = vld [vmem:[#allocation8 + $0x8] sm:$0xff] }
 0x528   :  { %v1703_v24 = vadd.f32 1.0, %v3052_v38 }
 0x529   :  { %3053 = vrcp.f32 %v1696_v18  ;;  %v3092_v18 = vld [vmem:[#allocation8] sm:$0xff] }
 0x52a   :  { %3055 = vrcp.f32 %v1703_v24 }
 0x536   :  { %v3054_v21 = vpop.eup %3053 }
 0x537   :  { %v1706_v41 = vmul.f32 %v3054_v21, %v1689_v8  ;;  %v3056_v49 = vpop.eup %3055 }
 0x538   :  { %v1711_v47 = vmul.f32 %v3056_v49, %v1710_v40 }
 0x539   :  { %v1707_v2 = vadd.f32 %v1706_v41, %v3514_v48 }
 0x53a   :  { %v1712_v34 = vsub.f32 1.0, %v1711_v47 }
 0x53b   :  { %3057 = vtanh.f32 %v1707_v2 }
 0x53c   :  { %v1713_v51 = vmul.f32 %v1712_v34, %v1478_v42 }
 0x548   :  { %v3058_v37 = vpop.eup %3057 }
 0x549   :  { %v1714_v54 = vmul.f32 %v3058_v37, %v1711_v47 }
 0x54b   :  { %v1715_v59 = vadd.f32 %v1714_v54, %v1713_v51 }
 0x54d   :  { %2906 = vmatmul.mubr.msk.f32.vlgmr.msra.gmra.mxu1 %vm128_vm0, %v1715_v59  ;;  %2917 = vmatmul.mubr.msk.f32.vlgmr.msra.gmra.mxu0 %vm128_vm0, %v1715_v59 }
 0x54e   :  { %2920 = vmatpush3.msra.mxu1 %v3414_v30  ;;  %2927 = vmatprep.mubr.msk.f32.mxu1 %vm3254_vm1, %v3253_v11 }
 0x54f   :  { %2921 = vmatprep.subr.mxu1 %v3253_v11  ;;  %2931 = vmatpush3.msra.mxu0 %v3334_v9 }
 0x550   :  { %2922 = vmatpush3.msra.mxu1 %v3425_v31  ;;  %2932 = vmatprep.subr.mxu0 %v3253_v11 }
 0x551   :  { %2923 = vmatprep.subr.mxu1 %v3253_v11  ;;  %2933 = vmatpush3.msra.mxu0 %v3341_v12 }
 0x552   :  { %2924 = vmatpush3.msra.mxu1 %v3431_v32  ;;  %2934 = vmatprep.subr.mxu0 %v3253_v11 }
 0x553   :  { %2925 = vmatprep.subr.mxu1 %v3253_v11  ;;  %2935 = vmatpush3.msra.mxu0 %v3351_v16 }
 0x554   :  { %2926 = vmatpush3.msra.mxu1 %v3438_v33  ;;  %2936 = vmatprep.subr.mxu0 %v3253_v11 }
 0x555   :  { %2928 = vmatmul.mubr.msk.f32.vlgmr.msra.gmra.mxu1 %vm128_vm0, %v1715_v59  ;;  %2941 = vmatprep.subr.mxu1 %v3253_v11 }
 0x556   :  { %2942 = vmatpush3.msra.mxu1 %v3389_v25  ;;  %2937 = vmatpush3.msra.mxu0 %v3357_v17 }
 0x557   :  { %2943 = vmatprep.subr.mxu1 %v3253_v11  ;;  %2938 = vmatprep.mubr.msk.f32.mxu0 %vm3254_vm1, %v3253_v11 }
 0x558   :  { %2944 = vmatpush3.msra.mxu1 %v3395_v26  ;;  %2949 = vmatprep.mubr.msk.f32.mxu1 %vm3254_vm1, %v3253_v11 }
 0x559   :  { %2945 = vmatprep.subr.mxu1 %v3253_v11  ;;  %2952 = vmatprep.subr.mxu0 %v3253_v11 }
 0x55a   :  { %2946 = vmatpush3.msra.mxu1 %v3401_v28 }
 0x55b   :  { %2947 = vmatprep.subr.mxu1 %v3253_v11 }
 0x55c   :  { %2948 = vmatpush3.msra.mxu1 %v3408_v29 }
 0x55d   :  { %2963 = vmatprep.subr.mxu1 %v3253_v11 }
 0x60d   :  { %v1785_v9 = vpop.f32.mrf.mxu1  ;;  %v1855_v12 = vpop.f32.mrf.mxu0 }
 0x60e   :  { %v1786_v16 = vadd.f32 %v3488_v56, %v1785_v9  ;;  %v1856_v17 = vadd.f32 %v3501_v10, %v1855_v12  ;;  %v2184_v12 = vld [vmem:[#allocation5 + $0x30] sm:$0xff] }
 0x60f   :  { %v2907_v48 = vpop.f32.mrf.mxu1  ;;  %v2918_v60 = vpop.f32.mrf.mxu0 }
 0x610   :  { %v1929_v52 = vadd.f32 %v1786_v16, %v3494_v61  ;;  %v1936_v39 = vadd.f32 %v1856_v17, %v3480_v46 }
 0x612   :  { %v2504_v62 = vmul.f32 -1.442695, %v1929_v52  ;;  %v2505_v63 = vmul.f32 -1.442695, %v1936_v39 }
 0x614   :  { %3059 = vpow2.f32 %v2504_v62 }
 0x615   :  { %v1925_v1 = vpop.f32.mrf.mxu1  ;;  %3061 = vpow2.f32 %v2505_v63 }
 0x616   :  { %v1926_v6 = vadd.f32 %v3520_v0, %v1925_v1 }
 0x617   :  { %v2929_v3 = vpop.f32.mrf.mxu1 }
 0x621   :  { %v3060_v4 = vpop.eup %3059 }
 0x622   :  { %v1933_v57 = vadd.f32 1.0, %v3060_v4  ;;  %v3062_v42 = vpop.eup %3061 }
 0x623   :  { %v1940_v35 = vadd.f32 1.0, %v3062_v42 }
 0x624   :  { %3063 = vrcp.f32 %v1933_v57 }
 0x625   :  { %3065 = vrcp.f32 %v1940_v35 }
 0x631   :  { %v3064_v7 = vpop.eup %3063 }
 0x632   :  { %v1943_v45 = vmul.f32 %v3064_v7, %v1926_v6  ;;  %v3066_v46 = vpop.eup %3065 }
 0x633   :  { %v1948_v14 = vmul.f32 %v3066_v46, %v1947_v36 }
 0x634   :  { %v1944_v61 = vadd.f32 %v1943_v45, %v3512_v44  ;;  %v3089_v44 = vld [vmem:[#allocation8 + $0x18] sm:$0xff] }
 0x635   :  { %v1949_v15 = vsub.f32 1.0, %v1948_v14 }
 0x636   :  { %3067 = vtanh.f32 %v1944_v61  ;;  %v2421_v61 = vld [vmem:[#allocation5 + $0x38] sm:$0xff] }
 0x637   :  { %v1950_v43 = vmul.f32 %v1949_v15, %v1715_v59 }
 0x643   :  { %v3068_v19 = vpop.eup %3067 }
 0x644   :  { %v1951_v20 = vmul.f32 %v3068_v19, %v1948_v14 }
 0x646   :  { %v3719_v22 = vadd.f32 %v1951_v20, %v1950_v43 }
 0x648   :  { %2939 = vmatmul.mubr.msk.f32.vlgmr.msra.gmra.mxu0 %vm128_vm0, %v3719_v22  ;;  %2950 = vmatmul.mubr.msk.f32.vlgmr.msra.gmra.mxu1 %vm128_vm0, %v3719_v22 }
 0x649   :  { %2953 = vmatpush3.msra.mxu0 %v3414_v30  ;;  %2960 = vmatprep.mubr.msk.f32.mxu0 %vm3254_vm1, %v3253_v11 }
 0x64a   :  { %2954 = vmatprep.subr.mxu0 %v3253_v11  ;;  %2964 = vmatpush3.msra.mxu1 %v3089_v44 }
 0x64b   :  { %2955 = vmatpush3.msra.mxu0 %v3425_v31  ;;  %2965 = vmatprep.subr.mxu1 %v3253_v11 }
 0x64c   :  { %2956 = vmatprep.subr.mxu0 %v3253_v11  ;;  %2966 = vmatpush3.msra.mxu1 %v3090_v23 }
 0x64d   :  { %2957 = vmatpush3.msra.mxu0 %v3431_v32  ;;  %2967 = vmatprep.subr.mxu1 %v3253_v11 }
 0x64e   :  { %2958 = vmatprep.subr.mxu0 %v3253_v11  ;;  %2968 = vmatpush3.msra.mxu1 %v3091_v27 }
 0x64f   :  { %2959 = vmatpush3.msra.mxu0 %v3438_v33  ;;  %2969 = vmatprep.subr.mxu1 %v3253_v11 }
 0x650   :  { %2961 = vmatmul.mubr.msk.f32.vlgmr.msra.gmra.mxu0 %vm128_vm0, %v3719_v22  ;;  %2974 = vmatprep.subr.mxu0 %v3253_v11 }
 0x651   :  { %2975 = vmatpush3.msra.mxu0 %v3389_v25  ;;  %2970 = vmatpush3.msra.mxu1 %v3092_v18 }
 0x652   :  { %2976 = vmatprep.subr.mxu0 %v3253_v11  ;;  %2971 = vmatprep.mubr.msk.f32.mxu1 %vm3254_vm1, %v3253_v11 }
 0x653   :  { %2977 = vmatpush3.msra.mxu0 %v3395_v26  ;;  %2982 = vmatprep.mubr.msk.f32.mxu0 %vm3254_vm1, %v3253_v11 }
 0x654   :  { %2978 = vmatprep.subr.mxu0 %v3253_v11  ;;  %2985 = vmatprep.subr.mxu1 %v3253_v11 }
 0x655   :  { %2979 = vmatpush3.msra.mxu0 %v3401_v28 }
 0x656   :  { %2980 = vmatprep.subr.mxu0 %v3253_v11 }
 0x657   :  { %2981 = vmatpush3.msra.mxu0 %v3408_v29 }
 0x708   :  { %v2022_v25 = vpop.f32.mrf.mxu0  ;;  %v2092_v38 = vpop.f32.mrf.mxu1 }
 0x709   :  { %v2023_v24 = vadd.f32 %v3488_v56, %v2022_v25  ;;  %v2093_v8 = vadd.f32 %v3501_v10, %v2092_v38 }
 0x70a   :  { %v2940_v26 = vpop.f32.mrf.mxu0  ;;  %v2951_v21 = vpop.f32.mrf.mxu1 }
 0x70b   :  { %v2166_v41 = vadd.f32 %v2023_v24, %v3503_v13  ;;  %v2173_v2 = vadd.f32 %v2093_v8, %v3492_v58 }
 0x70d   :  { %v2509_v49 = vmul.f32 -1.442695, %v2166_v41  ;;  %v2510_v40 = vmul.f32 -1.442695, %v2173_v2 }
 0x70f   :  { %3069 = vpow2.f32 %v2509_v49 }
 0x710   :  { %v2162_v28 = vpop.f32.mrf.mxu0  ;;  %3071 = vpow2.f32 %v2510_v40 }
 0x711   :  { %v2163_v54 = vadd.f32 %v3520_v0, %v2162_v28 }
 0x712   :  { %v2962_v47 = vpop.f32.mrf.mxu0 }
 0x71c   :  { %v3070_v34 = vpop.eup %3069 }
 0x71d   :  { %v2170_v29 = vadd.f32 1.0, %v3070_v34  ;;  %v3072_v37 = vpop.eup %3071 }
 0x71e   :  { %v2177_v51 = vadd.f32 1.0, %v3072_v37 }
 0x71f   :  { %3073 = vrcp.f32 %v2170_v29 }
 0x720   :  { %3075 = vrcp.f32 %v2177_v51 }
 0x72c   :  { %v3074_v59 = vpop.eup %3073 }
 0x72d   :  { %v2180_v9 = vmul.f32 %v3074_v59, %v2163_v54  ;;  %v3076_v58 = vpop.eup %3075 }
 0x72e   :  { %v2185_v16 = vmul.f32 %v3076_v58, %v2184_v12 }
 0x72f   :  { %v2181_v13 = vadd.f32 %v2180_v9, %v3518_v55 }
 0x730   :  { %v2186_v17 = vsub.f32 1.0, %v2185_v16 }
 0x731   :  { %3077 = vtanh.f32 %v2181_v13 }
 0x732   :  { %v2187_v60 = vmul.f32 %v2186_v17, %v3719_v22 }
 0x73e   :  { %v3078_v48 = vpop.eup %3077 }
 0x73f   :  { %v2188_v52 = vmul.f32 %v3078_v48, %v2185_v16 }
 0x741   :  { %v2189_v39 = vadd.f32 %v2188_v52, %v2187_v60 }
 0x743   :  { %2972 = vmatmul.mubr.msk.f32.vlgmr.msra.gmra.mxu1 %vm128_vm0, %v2189_v39  ;;  %2983 = vmatmul.mubr.msk.f32.vlgmr.msra.gmra.mxu0 %vm128_vm0, %v2189_v39 }
 0x744   :  { %2986 = vmatpush3.msra.mxu1 %v3414_v30  ;;  %2993 = vmatprep.mubr.msk.f32.mxu1 %vm3254_vm1, %v3253_v11 }
 0x745   :  { %2987 = vmatprep.subr.mxu1 %v3253_v11 }
 0x746   :  { %2988 = vmatpush3.msra.mxu1 %v3425_v31 }
 0x747   :  { %2989 = vmatprep.subr.mxu1 %v3253_v11 }
 0x748   :  { %2990 = vmatpush3.msra.mxu1 %v3431_v32 }
 0x749   :  { %2991 = vmatprep.subr.mxu1 %v3253_v11 }
 0x74a   :  { %2992 = vmatpush3.msra.mxu1 %v3438_v33 }
 0x74b   :  { %2994 = vmatmul.mubr.msk.f32.vlgmr.msra.gmra.mxu1 %vm128_vm0, %v2189_v39 }
 0x803   :  { %v2259_v55 = vpop.f32.mrf.mxu1  ;;  %v2329_v62 = vpop.f32.mrf.mxu0 }
 0x804   :  { %v2260_v30 = vadd.f32 %v3488_v56, %v2259_v55  ;;  %v2330_v63 = vadd.f32 %v3501_v10, %v2329_v62 }
 0x805   :  { %v2973_v1 = vpop.f32.mrf.mxu1  ;;  %v2984_v3 = vpop.f32.mrf.mxu0 }
 0x806   :  { %v2403_v31 = vadd.f32 %v2260_v30, %v3499_v5  ;;  %v2410_v4 = vadd.f32 %v2330_v63, %v3486_v53 }
 0x808   :  { %v2514_v57 = vmul.f32 -1.442695, %v2403_v31  ;;  %v2515_v32 = vmul.f32 -1.442695, %v2410_v4 }
 0x80a   :  { %3079 = vpow2.f32 %v2514_v57 }
 0x80b   :  { %v2399_v11 = vpop.f32.mrf.mxu1  ;;  %3081 = vpow2.f32 %v2515_v32 }
 0x80c   :  { %v2400_v56 = vadd.f32 %v3520_v0, %v2399_v11 }
 0x80d   :  { %v2995_v42 = vpop.f32.mrf.mxu1 }
 0x817   :  { %v3080_v33 = vpop.eup %3079 }
 0x818   :  { %v2407_v35 = vadd.f32 1.0, %v3080_v33  ;;  %v3082_v6 = vpop.eup %3081 }
 0x819   :  { %v2414_v7 = vadd.f32 1.0, %v3082_v6 }
 0x81a   :  { %3083 = vrcp.f32 %v2407_v35 }
 0x81b   :  { %3085 = vrcp.f32 %v2414_v7 }
 0x827   :  { %v3084_v10 = vpop.eup %3083 }
 0x828   :  { %v2417_v45 = vmul.f32 %v3084_v10, %v2400_v56  ;;  %v3086_v53 = vpop.eup %3085 }
 0x829   :  { %v2422_v46 = vmul.f32 %v3086_v53, %v2421_v61 }
 0x82a   :  { %v2418_v5 = vadd.f32 %v2417_v45, %v3516_v50 }
 0x82b   :  { %v2423_v36 = vsub.f32 1.0, %v2422_v46 }
 0x82c   :  { %3087 = vtanh.f32 %v2418_v5 }
 0x82d   :  { %v2424_v15 = vmul.f32 %v2423_v36, %v2189_v39 }
 0x839   :  { %v3088_v14 = vpop.eup %3087 }
 0x83a   :  { %v2425_v19 = vmul.f32 %v3088_v14, %v2422_v46 }
 0x83c   :  { %v2426_v43 = vadd.f32 %v2425_v19, %v2424_v15 }
 0x83e   :  { %2427 = vst.msk [vmem:[#allocation13] sm:$0xff] %vm128_vm0, %v2426_v43 }
 0x83f   :  { %3224 = shalt.err (!%p3221_p6)
}
 0x840   :  { %2437 = dma.vmem_to_hbm [thread:$0]  %s2435_s10, 128, %s3788_s7, [#allocation4]  }
 0x841   :  { %3241 = dma.done.wait [#allocation4], 128  }
 0x842   :  { %3242 = vsyncadd [#allocation4], 4294967168 }
 0x843   :  { %2441 = vsyncpa [#allocation3], 1 }
 0x844   :  { %2442 = vsyncpa [#allocation6], 1 }
 0x845   :  { %2443 = vsyncpa [#allocation9], 1 }
 0x846   :  { %2444 = vsyncpa [#allocation12], 1 }
 0x847   :  { %2445 = vsyncpa [#allocation4], 1 }

</bundles_post_ra>
